<compile_context>
chip_gen: v7x
topology: tpu7x:2x2x1
jax: 0.10.0
libtpu: 0.0.40
codegen_flags: <defaults>
</compile_context>

<pallas_src>
import functools

import jax
import jax.numpy as jnp
from jax.experimental import pallas as pl
from jax.experimental.pallas import tpu as pltpu


# ------------------------------ in-kernel math ------------------------------ #

def _erf(z):
    # Abramowitz & Stegun 7.1.26 rational approximation (max abs err 1.5e-7).
    # Used instead of lax.erf, which is not guaranteed to lower in Mosaic.
    a1, a2, a3, a4, a5 = (0.254829592, -0.284496736, 1.421413741,
                          -1.453152027, 1.061405429)
    p = 0.3275911
    az = jnp.abs(z)
    t = 1.0 / (1.0 + p * az)
    poly = ((((a5 * t + a4) * t + a3) * t + a2) * t + a1) * t
    y = 1.0 - poly * jnp.exp(-az * az)
    return jnp.where(z >= 0.0, y, -y)


def _gelu_exact(x):
    # Matches PyTorch nn.GELU() (erf form) to ~1e-7.
    return 0.5 * x * (1.0 + _erf(x * 0.7071067811865476))


def _layernorm(x, gamma, beta):
    mu = jnp.mean(x, axis=-1, keepdims=True)
    xc = x - mu
    var = jnp.mean(xc * xc, axis=-1, keepdims=True)
    return xc * jax.lax.rsqrt(var + 1e-5) * gamma + beta   # eps = nn.LayerNorm default


# ------------------------------- Pallas kernel ------------------------------ #

def _transformer_kernel(x_ref,
                        ln1_g_ref, ln1_b_ref,
                        wq_ref, wk_ref, wv_ref, wo_ref, bo_ref,
                        ln2_g_ref, ln2_b_ref,
                        w1_ref, b1_ref, w2_ref, b2_ref,
                        lnf_g_ref, lnf_b_ref,
                        o_ref, *, heads):
    """One batch element: full Transformer layer + final LayerNorm."""
    x = x_ref[0].astype(jnp.float32)                              # (S, D)

    # ---------------- PreNorm self-attention + residual ----------------
    xn = _layernorm(x, ln1_g_ref[...], ln1_b_ref[...])            # (S, D)

    # Residual + output-projection bias folded into the accumulator.
    acc = x + bo_ref[...]                                         # (S, D)
    for h in range(heads):                                        # static unroll
        # Head-major weight refs: leading-axis index = contiguous read, no lane slicing.
        qh = jnp.dot(xn, wq_ref[h], preferred_element_type=jnp.float32)  # scale folded into Wq
        kh = jnp.dot(xn, wk_ref[h], preferred_element_type=jnp.float32)
        vh = jnp.dot(xn, wv_ref[h], preferred_element_type=jnp.float32)
        # q @ k^T without materializing the transpose.
        dots = jax.lax.dot_general(qh, kh, (((1,), (1,)), ((), ())),
                                   preferred_element_type=jnp.float32)   # (S, S)
        dots = dots - jnp.max(dots, axis=-1, keepdims=True)              # stable softmax
        e = jnp.exp(dots)
        attn = e * pl.reciprocal(jnp.sum(e, axis=-1, keepdims=True), approx=True)
        oh = jnp.dot(attn, vh, preferred_element_type=jnp.float32)       # (S, dh)
        # Accumulate instead of lane-concatenating head outputs.
        acc = acc + jnp.dot(oh, wo_ref[h], preferred_element_type=jnp.float32)
    x1 = acc                                                      # (S, D)

    # ---------------- PreNorm FeedForward + residual ----------------
    xn2 = _layernorm(x1, ln2_g_ref[...], ln2_b_ref[...])
    hdn = jnp.dot(xn2, w1_ref[...], preferred_element_type=jnp.float32) + b1_ref[...]
    hdn = _gelu_exact(hdn)
    x2 = x1 + jnp.dot(hdn, w2_ref[...], preferred_element_type=jnp.float32) + b2_ref[...]

    # ---------------- final LayerNorm ----------------
    out = _layernorm(x2, lnf_g_ref[...], lnf_b_ref[...])
    o_ref[0] = out.astype(o_ref.dtype)


# --------------------------------- wrapper ---------------------------------- #

def prepare_kernel_params(p, *, heads, dim_head):
    """One-time parameter re-layout: head-major weights, scale folded into Wq."""
    dim = p["wq"].shape[0]
    inner = heads * dim_head
    scale = dim_head ** -0.5

    def split_heads(w, do_scale=False):
        if do_scale:
            w = w * scale
        return w.reshape(dim, heads, dim_head).transpose(1, 0, 2)   # (H, D, dh)

    row = lambda v: v.reshape(1, -1)
    return {
        "ln1_g": row(p["ln1_g"]), "ln1_b": row(p["ln1_b"]),
        "wq": split_heads(p["wq"], do_scale=True),
        "wk": split_heads(p["wkv"][:, :inner]),
        "wv": split_heads(p["wkv"][:, inner:]),
        "wo": p["wo"].reshape(heads, dim_head, dim),                # (H, dh, D)
        "bo": row(p["bo"]),
        "ln2_g": row(p["ln2_g"]), "ln2_b": row(p["ln2_b"]),
        "w1": p["w1"], "b1": row(p["b1"]),
        "w2": p["w2"], "b2": row(p["b2"]),
        "lnf_g": row(p["lnf_g"]), "lnf_b": row(p["lnf_b"]),
    }


@functools.partial(jax.jit, static_argnames=("heads", "dim_head"))
def transformer_forward(x, cls_, kp, *, heads, dim_head):
    """x: (B, N, D) tokens, cls_: (B, 1, D). Returns LN(transformer_layer(cat))."""
    xx = jnp.concatenate([cls_, x], axis=1)                        # (B, S, D)
    b, s, d = xx.shape
    f = kp["w1"].shape[1]

    kernel = functools.partial(_transformer_kernel, heads=heads)
    rep2 = lambda i: (0, 0)
    rep3 = lambda i: (0, 0, 0)

    return pl.pallas_call(
        kernel,
        out_shape=jax.ShapeDtypeStruct((b, s, d), xx.dtype),
        grid=(b,),
        in_specs=[
            pl.BlockSpec((1, s, d), lambda i: (i, 0, 0)),              # x (cls ++ tokens)
            pl.BlockSpec((1, d), rep2), pl.BlockSpec((1, d), rep2),    # LN1 gamma/beta
            pl.BlockSpec((heads, d, dim_head), rep3),                  # Wq (scale folded)
            pl.BlockSpec((heads, d, dim_head), rep3),                  # Wk
            pl.BlockSpec((heads, d, dim_head), rep3),                  # Wv
            pl.BlockSpec((heads, dim_head, d), rep3),                  # Wo (head-major)
            pl.BlockSpec((1, d), rep2),                                # bo
            pl.BlockSpec((1, d), rep2), pl.BlockSpec((1, d), rep2),    # LN2 gamma/beta
            pl.BlockSpec((d, f), rep2), pl.BlockSpec((1, f), rep2),    # W1, b1
            pl.BlockSpec((f, d), rep2), pl.BlockSpec((1, d), rep2),    # W2, b2
            pl.BlockSpec((1, d), rep2), pl.BlockSpec((1, d), rep2),    # final LN gamma/beta
        ],
        out_specs=pl.BlockSpec((1, s, d), lambda i: (i, 0, 0)),
        compiler_params=pltpu.CompilerParams(
            dimension_semantics=("parallel",)),                        # 2 TCs on v7x
    )(xx,
      kp["ln1_g"], kp["ln1_b"],
      kp["wq"], kp["wk"], kp["wv"], kp["wo"], kp["bo"],
      kp["ln2_g"], kp["ln2_b"],
      kp["w1"], kp["b1"], kp["w2"], kp["b2"],
      kp["lnf_g"], kp["lnf_b"])


# -------------------------------- parameters -------------------------------- #

def init_transformer_params(key, dim, heads, dim_head, mlp_dim):
    inner = heads * dim_head
    keys = jax.random.split(key, 8)

    def uni(k, shape, fan_in):
        lim = 1.0 / (fan_in ** 0.5)
        return jax.random.uniform(k, shape, jnp.float32, -lim, lim)

    return {
        "ln1_g": jnp.ones((dim,), jnp.float32), "ln1_b": jnp.zeros((dim,), jnp.float32),
        "wq": uni(keys[0], (dim, inner), dim),
        "wkv": uni(keys[1], (dim, 2 * inner), dim),
        "wo": uni(keys[2], (inner, dim), inner),
        "bo": uni(keys[3], (dim,), inner),
        "ln2_g": jnp.ones((dim,), jnp.float32), "ln2_b": jnp.zeros((dim,), jnp.float32),
        "w1": uni(keys[4], (dim, mlp_dim), dim),
        "b1": uni(keys[5], (mlp_dim,), dim),
        "w2": uni(keys[6], (mlp_dim, dim), mlp_dim),
        "b2": uni(keys[7], (dim,), mlp_dim),
        "lnf_g": jnp.ones((dim,), jnp.float32), "lnf_b": jnp.zeros((dim,), jnp.float32),
    }


# ------------------------------- pure-JAX ref -------------------------------- #

def _ref_transformer(x, cls_, p, *, heads, dim_head):
    xx = jnp.concatenate([cls_, x], axis=1)
    inner = heads * dim_head

    def ln(t, g, b):
        mu = jnp.mean(t, axis=-1, keepdims=True)
        var = jnp.mean((t - mu) ** 2, axis=-1, keepdims=True)
        return (t - mu) / jnp.sqrt(var + 1e-5) * g + b

    # attention
    xn = ln(xx, p["ln1_g"], p["ln1_b"])
    q = xn @ p["wq"]
    kv = xn @ p["wkv"]
    k, v = kv[..., :inner], kv[..., inner:]

    def split(t):
        b, n, _ = t.shape
        return t.reshape(b, n, heads, dim_head).transpose(0, 2, 1, 3)

    q, k, v = split(q), split(k), split(v)
    dots = jnp.einsum("bhid,bhjd->bhij", q, k) * (dim_head ** -0.5)
    attn = jax.nn.softmax(dots, axis=-1)
    o = jnp.einsum("bhij,bhjd->bhid", attn, v)
    b, h, n, d = o.shape
    o = o.transpose(0, 2, 1, 3).reshape(b, n, h * d)
    xx = o @ p["wo"] + p["bo"] + xx

    # feedforward (exact erf GELU, matching nn.GELU())
    xn2 = ln(xx, p["ln2_g"], p["ln2_b"])
    hdn = jax.nn.gelu(xn2 @ p["w1"] + p["b1"], approximate=False)
    xx = hdn @ p["w2"] + p["b2"] + xx

    return ln(xx, p["lnf_g"], p["lnf_b"])


# ----------------------------------- main ------------------------------------ #

if __name__ == "__main__":
    B, N_TOK, DIM = 2, 8, 32
    HEADS, DIM_HEAD, MLP_DIM = 4, 8, 64        # inner_dim = 32, S = 9

    root = jax.random.PRNGKey(0)
    kx, kc, kp = jax.random.split(root, 3)
    x = jax.random.normal(kx, (B, N_TOK, DIM), jnp.float32)
    cls_ = jax.random.normal(kc, (B, 1, DIM), jnp.float32)

    params = init_transformer_params(kp, DIM, HEADS, DIM_HEAD, MLP_DIM)
    kparams = prepare_kernel_params(params, heads=HEADS, dim_head=DIM_HEAD)

    out = transformer_forward(x, cls_, kparams, heads=HEADS, dim_head=DIM_HEAD)
    jax.block_until_ready(out)

    # sanity check against pure-JAX reference (tolerance covers the EUP
    # approximate reciprocal in the softmax and the erf polynomial)
    ref = _ref_transformer(x, cls_, params, heads=HEADS, dim_head=DIM_HEAD)
    err = float(jnp.max(jnp.abs(out - ref)))
    assert err < 2e-3, f"max abs error {err}"

    print("KERNEL_OK")
</pallas_src>

<mosaic_0001>
module attributes {stable_mosaic.version = 11 : i64} {
  func.func @_transformer_kernel(%arg0: i32, %arg1: memref<1x9x32xf32, #tpu.memory_space<vmem>>, %arg2: memref<1x32xf32, #tpu.memory_space<vmem>>, %arg3: memref<1x32xf32, #tpu.memory_space<vmem>>, %arg4: memref<4x32x8xf32, #tpu.memory_space<vmem>>, %arg5: memref<4x32x8xf32, #tpu.memory_space<vmem>>, %arg6: memref<4x32x8xf32, #tpu.memory_space<vmem>>, %arg7: memref<4x8x32xf32, #tpu.memory_space<vmem>>, %arg8: memref<1x32xf32, #tpu.memory_space<vmem>>, %arg9: memref<1x32xf32, #tpu.memory_space<vmem>>, %arg10: memref<1x32xf32, #tpu.memory_space<vmem>>, %arg11: memref<32x64xf32, #tpu.memory_space<vmem>>, %arg12: memref<1x64xf32, #tpu.memory_space<vmem>>, %arg13: memref<64x32xf32, #tpu.memory_space<vmem>>, %arg14: memref<1x32xf32, #tpu.memory_space<vmem>>, %arg15: memref<1x32xf32, #tpu.memory_space<vmem>>, %arg16: memref<1x32xf32, #tpu.memory_space<vmem>>, %arg17: memref<1x9x32xf32, #tpu.memory_space<vmem>>) attributes {dimension_semantics = [#tpu.dimension_semantics<parallel>], iteration_bounds = array<i64: 2>, scalar_prefetch = 0 : i64, scratch_operands = 0 : i64, tpu.core_type = #tpu.core_type<tc>, window_params = [{transform_indices = @transform_0, window_bounds = array<i64: 1, 9, 32>}, {pipeline_mode = #tpu.pipeline_mode<synchronous>, transform_indices = @transform_1, window_bounds = array<i64: 1, 32>}, {pipeline_mode = #tpu.pipeline_mode<synchronous>, transform_indices = @transform_2, window_bounds = array<i64: 1, 32>}, {pipeline_mode = #tpu.pipeline_mode<synchronous>, transform_indices = @transform_3, window_bounds = array<i64: 4, 32, 8>}, {pipeline_mode = #tpu.pipeline_mode<synchronous>, transform_indices = @transform_4, window_bounds = array<i64: 4, 32, 8>}, {pipeline_mode = #tpu.pipeline_mode<synchronous>, transform_indices = @transform_5, window_bounds = array<i64: 4, 32, 8>}, {pipeline_mode = #tpu.pipeline_mode<synchronous>, transform_indices = @transform_6, window_bounds = array<i64: 4, 8, 32>}, {pipeline_mode = #tpu.pipeline_mode<synchronous>, transform_indices = @transform_7, window_bounds = array<i64: 1, 32>}, {pipeline_mode = #tpu.pipeline_mode<synchronous>, transform_indices = @transform_8, window_bounds = array<i64: 1, 32>}, {pipeline_mode = #tpu.pipeline_mode<synchronous>, transform_indices = @transform_9, window_bounds = array<i64: 1, 32>}, {pipeline_mode = #tpu.pipeline_mode<synchronous>, transform_indices = @transform_10, window_bounds = array<i64: 32, 64>}, {pipeline_mode = #tpu.pipeline_mode<synchronous>, transform_indices = @transform_11, window_bounds = array<i64: 1, 64>}, {pipeline_mode = #tpu.pipeline_mode<synchronous>, transform_indices = @transform_12, window_bounds = array<i64: 64, 32>}, {pipeline_mode = #tpu.pipeline_mode<synchronous>, transform_indices = @transform_13, window_bounds = array<i64: 1, 32>}, {pipeline_mode = #tpu.pipeline_mode<synchronous>, transform_indices = @transform_14, window_bounds = array<i64: 1, 32>}, {pipeline_mode = #tpu.pipeline_mode<synchronous>, transform_indices = @transform_15, window_bounds = array<i64: 1, 32>}, {transform_indices = @transform_16, window_bounds = array<i64: 1, 9, 32>}]} {
    %c0 = arith.constant 0 : index
    %c0_0 = arith.constant 0 : index
    %c0_1 = arith.constant 0 : index
    %0 = vector.load %arg1[%c0, %c0_0, %c0_1] : memref<1x9x32xf32, #tpu.memory_space<vmem>>, vector<1x9x32xf32>
    %1 = vector.shape_cast %0 : vector<1x9x32xf32> to vector<9x32xf32>
    %c0_2 = arith.constant 0 : index
    %c0_3 = arith.constant 0 : index
    %2 = vector.load %arg2[%c0_2, %c0_3] : memref<1x32xf32, #tpu.memory_space<vmem>>, vector<1x32xf32>
    %c0_4 = arith.constant 0 : index
    %c0_5 = arith.constant 0 : index
    %3 = vector.load %arg3[%c0_4, %c0_5] : memref<1x32xf32, #tpu.memory_space<vmem>>, vector<1x32xf32>
    %cst = arith.constant dense<0.000000e+00> : vector<9xf32>
    %4 = vector.multi_reduction <add>, %1, %cst [1] : vector<9x32xf32> to vector<9xf32>
    %5 = vector.shape_cast %4 : vector<9xf32> to vector<9x1xf32>
    %cst_6 = arith.constant 3.200000e+01 : f32
    %6 = vector.broadcast %cst_6 : f32 to vector<9x1xf32>
    %7 = arith.divf %5, %6 : vector<9x1xf32>
    %8 = vector.broadcast %7 : vector<9x1xf32> to vector<9x32xf32>
    %9 = arith.subf %1, %8 : vector<9x32xf32>
    %10 = arith.mulf %9, %9 : vector<9x32xf32>
    %cst_7 = arith.constant dense<0.000000e+00> : vector<9xf32>
    %11 = vector.multi_reduction <add>, %10, %cst_7 [1] : vector<9x32xf32> to vector<9xf32>
    %12 = vector.shape_cast %11 : vector<9xf32> to vector<9x1xf32>
    %cst_8 = arith.constant 3.200000e+01 : f32
    %13 = vector.broadcast %cst_8 : f32 to vector<9x1xf32>
    %14 = arith.divf %12, %13 : vector<9x1xf32>
    %cst_9 = arith.constant 9.99999974E-6 : f32
    %15 = vector.broadcast %cst_9 : f32 to vector<9x1xf32>
    %16 = arith.addf %14, %15 : vector<9x1xf32>
    %17 = math.rsqrt %16 : vector<9x1xf32>
    %18 = vector.broadcast %17 : vector<9x1xf32> to vector<9x32xf32>
    %19 = arith.mulf %9, %18 : vector<9x32xf32>
    %20 = vector.broadcast %2 : vector<1x32xf32> to vector<9x32xf32>
    %21 = arith.mulf %19, %20 : vector<9x32xf32>
    %22 = vector.broadcast %3 : vector<1x32xf32> to vector<9x32xf32>
    %23 = arith.addf %21, %22 : vector<9x32xf32>
    %c0_10 = arith.constant 0 : index
    %c0_11 = arith.constant 0 : index
    %24 = vector.load %arg8[%c0_10, %c0_11] : memref<1x32xf32, #tpu.memory_space<vmem>>, vector<1x32xf32>
    %25 = vector.broadcast %24 : vector<1x32xf32> to vector<9x32xf32>
    %26 = arith.addf %1, %25 : vector<9x32xf32>
    %c0_12 = arith.constant 0 : index
    %c0_13 = arith.constant 0 : index
    %c0_14 = arith.constant 0 : index
    %27 = vector.load %arg4[%c0_12, %c0_13, %c0_14] : memref<4x32x8xf32, #tpu.memory_space<vmem>>, vector<1x32x8xf32>
    %28 = vector.shape_cast %27 : vector<1x32x8xf32> to vector<32x8xf32>
    %cst_15 = arith.constant dense<0.000000e+00> : vector<9x8xf32>
    %29 = tpu.matmul %23, %28, %cst_15 {dimension_numbers = #tpu.dot_dimension_numbers<[1], [0], [0], [1], [0, 0, 1, 1], [], []>} : vector<9x32xf32>, vector<32x8xf32>, vector<9x8xf32> -> vector<9x8xf32>
    %c0_16 = arith.constant 0 : index
    %c0_17 = arith.constant 0 : index
    %c0_18 = arith.constant 0 : index
    %30 = vector.load %arg5[%c0_16, %c0_17, %c0_18] : memref<4x32x8xf32, #tpu.memory_space<vmem>>, vector<1x32x8xf32>
    %31 = vector.shape_cast %30 : vector<1x32x8xf32> to vector<32x8xf32>
    %cst_19 = arith.constant dense<0.000000e+00> : vector<9x8xf32>
    %32 = tpu.matmul %23, %31, %cst_19 {dimension_numbers = #tpu.dot_dimension_numbers<[1], [0], [0], [1], [0, 0, 1, 1], [], []>} : vector<9x32xf32>, vector<32x8xf32>, vector<9x8xf32> -> vector<9x8xf32>
    %c0_20 = arith.constant 0 : index
    %c0_21 = arith.constant 0 : index
    %c0_22 = arith.constant 0 : index
    %33 = vector.load %arg6[%c0_20, %c0_21, %c0_22] : memref<4x32x8xf32, #tpu.memory_space<vmem>>, vector<1x32x8xf32>
    %34 = vector.shape_cast %33 : vector<1x32x8xf32> to vector<32x8xf32>
    %cst_23 = arith.constant dense<0.000000e+00> : vector<9x8xf32>
    %35 = tpu.matmul %23, %34, %cst_23 {dimension_numbers = #tpu.dot_dimension_numbers<[1], [0], [0], [1], [0, 0, 1, 1], [], []>} : vector<9x32xf32>, vector<32x8xf32>, vector<9x8xf32> -> vector<9x8xf32>
    %cst_24 = arith.constant dense<0.000000e+00> : vector<9x9xf32>
    %36 = tpu.matmul %29, %32, %cst_24 {dimension_numbers = #tpu.dot_dimension_numbers<[1], [1], [0], [0], [0, 0, 1, 0], [], []>} : vector<9x8xf32>, vector<9x8xf32>, vector<9x9xf32> -> vector<9x9xf32>
    %cst_25 = arith.constant dense<0xFF800000> : vector<9xf32>
    %37 = vector.multi_reduction <maximumf>, %36, %cst_25 [1] : vector<9x9xf32> to vector<9xf32>
    %38 = vector.shape_cast %37 : vector<9xf32> to vector<9x1xf32>
    %39 = vector.broadcast %38 : vector<9x1xf32> to vector<9x9xf32>
    %40 = arith.subf %36, %39 : vector<9x9xf32>
    %41 = math.exp %40 : vector<9x9xf32>
    %cst_26 = arith.constant dense<0.000000e+00> : vector<9xf32>
    %42 = vector.multi_reduction <add>, %41, %cst_26 [1] : vector<9x9xf32> to vector<9xf32>
    %43 = vector.shape_cast %42 : vector<9xf32> to vector<9x1xf32>
    %44 = tpu.reciprocal %43 {approx = true} : vector<9x1xf32> -> vector<9x1xf32>
    %45 = vector.broadcast %44 : vector<9x1xf32> to vector<9x9xf32>
    %46 = arith.mulf %41, %45 : vector<9x9xf32>
    %cst_27 = arith.constant dense<0.000000e+00> : vector<9x8xf32>
    %47 = tpu.matmul %46, %35, %cst_27 {dimension_numbers = #tpu.dot_dimension_numbers<[1], [0], [0], [1], [0, 0, 1, 1], [], []>} : vector<9x9xf32>, vector<9x8xf32>, vector<9x8xf32> -> vector<9x8xf32>
    %c0_28 = arith.constant 0 : index
    %c0_29 = arith.constant 0 : index
    %c0_30 = arith.constant 0 : index
    %48 = vector.load %arg7[%c0_28, %c0_29, %c0_30] : memref<4x8x32xf32, #tpu.memory_space<vmem>>, vector<1x8x32xf32>
    %49 = vector.shape_cast %48 : vector<1x8x32xf32> to vector<8x32xf32>
    %cst_31 = arith.constant dense<0.000000e+00> : vector<9x32xf32>
    %50 = tpu.matmul %47, %49, %cst_31 {dimension_numbers = #tpu.dot_dimension_numbers<[1], [0], [0], [1], [0, 0, 1, 1], [], []>} : vector<9x8xf32>, vector<8x32xf32>, vector<9x32xf32> -> vector<9x32xf32>
    %51 = arith.addf %26, %50 : vector<9x32xf32>
    %c1 = arith.constant 1 : index
    %c0_32 = arith.constant 0 : index
    %c0_33 = arith.constant 0 : index
    %52 = vector.load %arg4[%c1, %c0_32, %c0_33] : memref<4x32x8xf32, #tpu.memory_space<vmem>>, vector<1x32x8xf32>
    %53 = vector.shape_cast %52 : vector<1x32x8xf32> to vector<32x8xf32>
    %cst_34 = arith.constant dense<0.000000e+00> : vector<9x8xf32>
    %54 = tpu.matmul %23, %53, %cst_34 {dimension_numbers = #tpu.dot_dimension_numbers<[1], [0], [0], [1], [0, 0, 1, 1], [], []>} : vector<9x32xf32>, vector<32x8xf32>, vector<9x8xf32> -> vector<9x8xf32>
    %c1_35 = arith.constant 1 : index
    %c0_36 = arith.constant 0 : index
    %c0_37 = arith.constant 0 : index
    %55 = vector.load %arg5[%c1_35, %c0_36, %c0_37] : memref<4x32x8xf32, #tpu.memory_space<vmem>>, vector<1x32x8xf32>
    %56 = vector.shape_cast %55 : vector<1x32x8xf32> to vector<32x8xf32>
    %cst_38 = arith.constant dense<0.000000e+00> : vector<9x8xf32>
    %57 = tpu.matmul %23, %56, %cst_38 {dimension_numbers = #tpu.dot_dimension_numbers<[1], [0], [0], [1], [0, 0, 1, 1], [], []>} : vector<9x32xf32>, vector<32x8xf32>, vector<9x8xf32> -> vector<9x8xf32>
    %c1_39 = arith.constant 1 : index
    %c0_40 = arith.constant 0 : index
    %c0_41 = arith.constant 0 : index
    %58 = vector.load %arg6[%c1_39, %c0_40, %c0_41] : memref<4x32x8xf32, #tpu.memory_space<vmem>>, vector<1x32x8xf32>
    %59 = vector.shape_cast %58 : vector<1x32x8xf32> to vector<32x8xf32>
    %cst_42 = arith.constant dense<0.000000e+00> : vector<9x8xf32>
    %60 = tpu.matmul %23, %59, %cst_42 {dimension_numbers = #tpu.dot_dimension_numbers<[1], [0], [0], [1], [0, 0, 1, 1], [], []>} : vector<9x32xf32>, vector<32x8xf32>, vector<9x8xf32> -> vector<9x8xf32>
    %cst_43 = arith.constant dense<0.000000e+00> : vector<9x9xf32>
    %61 = tpu.matmul %54, %57, %cst_43 {dimension_numbers = #tpu.dot_dimension_numbers<[1], [1], [0], [0], [0, 0, 1, 0], [], []>} : vector<9x8xf32>, vector<9x8xf32>, vector<9x9xf32> -> vector<9x9xf32>
    %cst_44 = arith.constant dense<0xFF800000> : vector<9xf32>
    %62 = vector.multi_reduction <maximumf>, %61, %cst_44 [1] : vector<9x9xf32> to vector<9xf32>
    %63 = vector.shape_cast %62 : vector<9xf32> to vector<9x1xf32>
    %64 = vector.broadcast %63 : vector<9x1xf32> to vector<9x9xf32>
    %65 = arith.subf %61, %64 : vector<9x9xf32>
    %66 = math.exp %65 : vector<9x9xf32>
    %cst_45 = arith.constant dense<0.000000e+00> : vector<9xf32>
    %67 = vector.multi_reduction <add>, %66, %cst_45 [1] : vector<9x9xf32> to vector<9xf32>
    %68 = vector.shape_cast %67 : vector<9xf32> to vector<9x1xf32>
    %69 = tpu.reciprocal %68 {approx = true} : vector<9x1xf32> -> vector<9x1xf32>
    %70 = vector.broadcast %69 : vector<9x1xf32> to vector<9x9xf32>
    %71 = arith.mulf %66, %70 : vector<9x9xf32>
    %cst_46 = arith.constant dense<0.000000e+00> : vector<9x8xf32>
    %72 = tpu.matmul %71, %60, %cst_46 {dimension_numbers = #tpu.dot_dimension_numbers<[1], [0], [0], [1], [0, 0, 1, 1], [], []>} : vector<9x9xf32>, vector<9x8xf32>, vector<9x8xf32> -> vector<9x8xf32>
    %c1_47 = arith.constant 1 : index
    %c0_48 = arith.constant 0 : index
    %c0_49 = arith.constant 0 : index
    %73 = vector.load %arg7[%c1_47, %c0_48, %c0_49] : memref<4x8x32xf32, #tpu.memory_space<vmem>>, vector<1x8x32xf32>
    %74 = vector.shape_cast %73 : vector<1x8x32xf32> to vector<8x32xf32>
    %cst_50 = arith.constant dense<0.000000e+00> : vector<9x32xf32>
    %75 = tpu.matmul %72, %74, %cst_50 {dimension_numbers = #tpu.dot_dimension_numbers<[1], [0], [0], [1], [0, 0, 1, 1], [], []>} : vector<9x8xf32>, vector<8x32xf32>, vector<9x32xf32> -> vector<9x32xf32>
    %76 = arith.addf %51, %75 : vector<9x32xf32>
    %c2 = arith.constant 2 : index
    %c0_51 = arith.constant 0 : index
    %c0_52 = arith.constant 0 : index
    %77 = vector.load %arg4[%c2, %c0_51, %c0_52] : memref<4x32x8xf32, #tpu.memory_space<vmem>>, vector<1x32x8xf32>
    %78 = vector.shape_cast %77 : vector<1x32x8xf32> to vector<32x8xf32>
    %cst_53 = arith.constant dense<0.000000e+00> : vector<9x8xf32>
    %79 = tpu.matmul %23, %78, %cst_53 {dimension_numbers = #tpu.dot_dimension_numbers<[1], [0], [0], [1], [0, 0, 1, 1], [], []>} : vector<9x32xf32>, vector<32x8xf32>, vector<9x8xf32> -> vector<9x8xf32>
    %c2_54 = arith.constant 2 : index
    %c0_55 = arith.constant 0 : index
    %c0_56 = arith.constant 0 : index
    %80 = vector.load %arg5[%c2_54, %c0_55, %c0_56] : memref<4x32x8xf32, #tpu.memory_space<vmem>>, vector<1x32x8xf32>
    %81 = vector.shape_cast %80 : vector<1x32x8xf32> to vector<32x8xf32>
    %cst_57 = arith.constant dense<0.000000e+00> : vector<9x8xf32>
    %82 = tpu.matmul %23, %81, %cst_57 {dimension_numbers = #tpu.dot_dimension_numbers<[1], [0], [0], [1], [0, 0, 1, 1], [], []>} : vector<9x32xf32>, vector<32x8xf32>, vector<9x8xf32> -> vector<9x8xf32>
    %c2_58 = arith.constant 2 : index
    %c0_59 = arith.constant 0 : index
    %c0_60 = arith.constant 0 : index
    %83 = vector.load %arg6[%c2_58, %c0_59, %c0_60] : memref<4x32x8xf32, #tpu.memory_space<vmem>>, vector<1x32x8xf32>
    %84 = vector.shape_cast %83 : vector<1x32x8xf32> to vector<32x8xf32>
    %cst_61 = arith.constant dense<0.000000e+00> : vector<9x8xf32>
    %85 = tpu.matmul %23, %84, %cst_61 {dimension_numbers = #tpu.dot_dimension_numbers<[1], [0], [0], [1], [0, 0, 1, 1], [], []>} : vector<9x32xf32>, vector<32x8xf32>, vector<9x8xf32> -> vector<9x8xf32>
    %cst_62 = arith.constant dense<0.000000e+00> : vector<9x9xf32>
    %86 = tpu.matmul %79, %82, %cst_62 {dimension_numbers = #tpu.dot_dimension_numbers<[1], [1], [0], [0], [0, 0, 1, 0], [], []>} : vector<9x8xf32>, vector<9x8xf32>, vector<9x9xf32> -> vector<9x9xf32>
    %cst_63 = arith.constant dense<0xFF800000> : vector<9xf32>
    %87 = vector.multi_reduction <maximumf>, %86, %cst_63 [1] : vector<9x9xf32> to vector<9xf32>
    %88 = vector.shape_cast %87 : vector<9xf32> to vector<9x1xf32>
    %89 = vector.broadcast %88 : vector<9x1xf32> to vector<9x9xf32>
    %90 = arith.subf %86, %89 : vector<9x9xf32>
    %91 = math.exp %90 : vector<9x9xf32>
    %cst_64 = arith.constant dense<0.000000e+00> : vector<9xf32>
    %92 = vector.multi_reduction <add>, %91, %cst_64 [1] : vector<9x9xf32> to vector<9xf32>
    %93 = vector.shape_cast %92 : vector<9xf32> to vector<9x1xf32>
    %94 = tpu.reciprocal %93 {approx = true} : vector<9x1xf32> -> vector<9x1xf32>
    %95 = vector.broadcast %94 : vector<9x1xf32> to vector<9x9xf32>
    %96 = arith.mulf %91, %95 : vector<9x9xf32>
    %cst_65 = arith.constant dense<0.000000e+00> : vector<9x8xf32>
    %97 = tpu.matmul %96, %85, %cst_65 {dimension_numbers = #tpu.dot_dimension_numbers<[1], [0], [0], [1], [0, 0, 1, 1], [], []>} : vector<9x9xf32>, vector<9x8xf32>, vector<9x8xf32> -> vector<9x8xf32>
    %c2_66 = arith.constant 2 : index
    %c0_67 = arith.constant 0 : index
    %c0_68 = arith.constant 0 : index
    %98 = vector.load %arg7[%c2_66, %c0_67, %c0_68] : memref<4x8x32xf32, #tpu.memory_space<vmem>>, vector<1x8x32xf32>
    %99 = vector.shape_cast %98 : vector<1x8x32xf32> to vector<8x32xf32>
    %cst_69 = arith.constant dense<0.000000e+00> : vector<9x32xf32>
    %100 = tpu.matmul %97, %99, %cst_69 {dimension_numbers = #tpu.dot_dimension_numbers<[1], [0], [0], [1], [0, 0, 1, 1], [], []>} : vector<9x8xf32>, vector<8x32xf32>, vector<9x32xf32> -> vector<9x32xf32>
    %101 = arith.addf %76, %100 : vector<9x32xf32>
    %c3 = arith.constant 3 : index
    %c0_70 = arith.constant 0 : index
    %c0_71 = arith.constant 0 : index
    %102 = vector.load %arg4[%c3, %c0_70, %c0_71] : memref<4x32x8xf32, #tpu.memory_space<vmem>>, vector<1x32x8xf32>
    %103 = vector.shape_cast %102 : vector<1x32x8xf32> to vector<32x8xf32>
    %cst_72 = arith.constant dense<0.000000e+00> : vector<9x8xf32>
    %104 = tpu.matmul %23, %103, %cst_72 {dimension_numbers = #tpu.dot_dimension_numbers<[1], [0], [0], [1], [0, 0, 1, 1], [], []>} : vector<9x32xf32>, vector<32x8xf32>, vector<9x8xf32> -> vector<9x8xf32>
    %c3_73 = arith.constant 3 : index
    %c0_74 = arith.constant 0 : index
    %c0_75 = arith.constant 0 : index
    %105 = vector.load %arg5[%c3_73, %c0_74, %c0_75] : memref<4x32x8xf32, #tpu.memory_space<vmem>>, vector<1x32x8xf32>
    %106 = vector.shape_cast %105 : vector<1x32x8xf32> to vector<32x8xf32>
    %cst_76 = arith.constant dense<0.000000e+00> : vector<9x8xf32>
    %107 = tpu.matmul %23, %106, %cst_76 {dimension_numbers = #tpu.dot_dimension_numbers<[1], [0], [0], [1], [0, 0, 1, 1], [], []>} : vector<9x32xf32>, vector<32x8xf32>, vector<9x8xf32> -> vector<9x8xf32>
    %c3_77 = arith.constant 3 : index
    %c0_78 = arith.constant 0 : index
    %c0_79 = arith.constant 0 : index
    %108 = vector.load %arg6[%c3_77, %c0_78, %c0_79] : memref<4x32x8xf32, #tpu.memory_space<vmem>>, vector<1x32x8xf32>
    %109 = vector.shape_cast %108 : vector<1x32x8xf32> to vector<32x8xf32>
    %cst_80 = arith.constant dense<0.000000e+00> : vector<9x8xf32>
    %110 = tpu.matmul %23, %109, %cst_80 {dimension_numbers = #tpu.dot_dimension_numbers<[1], [0], [0], [1], [0, 0, 1, 1], [], []>} : vector<9x32xf32>, vector<32x8xf32>, vector<9x8xf32> -> vector<9x8xf32>
    %cst_81 = arith.constant dense<0.000000e+00> : vector<9x9xf32>
    %111 = tpu.matmul %104, %107, %cst_81 {dimension_numbers = #tpu.dot_dimension_numbers<[1], [1], [0], [0], [0, 0, 1, 0], [], []>} : vector<9x8xf32>, vector<9x8xf32>, vector<9x9xf32> -> vector<9x9xf32>
    %cst_82 = arith.constant dense<0xFF800000> : vector<9xf32>
    %112 = vector.multi_reduction <maximumf>, %111, %cst_82 [1] : vector<9x9xf32> to vector<9xf32>
    %113 = vector.shape_cast %112 : vector<9xf32> to vector<9x1xf32>
    %114 = vector.broadcast %113 : vector<9x1xf32> to vector<9x9xf32>
    %115 = arith.subf %111, %114 : vector<9x9xf32>
    %116 = math.exp %115 : vector<9x9xf32>
    %cst_83 = arith.constant dense<0.000000e+00> : vector<9xf32>
    %117 = vector.multi_reduction <add>, %116, %cst_83 [1] : vector<9x9xf32> to vector<9xf32>
    %118 = vector.shape_cast %117 : vector<9xf32> to vector<9x1xf32>
    %119 = tpu.reciprocal %118 {approx = true} : vector<9x1xf32> -> vector<9x1xf32>
    %120 = vector.broadcast %119 : vector<9x1xf32> to vector<9x9xf32>
    %121 = arith.mulf %116, %120 : vector<9x9xf32>
    %cst_84 = arith.constant dense<0.000000e+00> : vector<9x8xf32>
    %122 = tpu.matmul %121, %110, %cst_84 {dimension_numbers = #tpu.dot_dimension_numbers<[1], [0], [0], [1], [0, 0, 1, 1], [], []>} : vector<9x9xf32>, vector<9x8xf32>, vector<9x8xf32> -> vector<9x8xf32>
    %c3_85 = arith.constant 3 : index
    %c0_86 = arith.constant 0 : index
    %c0_87 = arith.constant 0 : index
    %123 = vector.load %arg7[%c3_85, %c0_86, %c0_87] : memref<4x8x32xf32, #tpu.memory_space<vmem>>, vector<1x8x32xf32>
    %124 = vector.shape_cast %123 : vector<1x8x32xf32> to vector<8x32xf32>
    %cst_88 = arith.constant dense<0.000000e+00> : vector<9x32xf32>
    %125 = tpu.matmul %122, %124, %cst_88 {dimension_numbers = #tpu.dot_dimension_numbers<[1], [0], [0], [1], [0, 0, 1, 1], [], []>} : vector<9x8xf32>, vector<8x32xf32>, vector<9x32xf32> -> vector<9x32xf32>
    %126 = arith.addf %101, %125 : vector<9x32xf32>
    %c0_89 = arith.constant 0 : index
    %c0_90 = arith.constant 0 : index
    %127 = vector.load %arg9[%c0_89, %c0_90] : memref<1x32xf32, #tpu.memory_space<vmem>>, vector<1x32xf32>
    %c0_91 = arith.constant 0 : index
    %c0_92 = arith.constant 0 : index
    %128 = vector.load %arg10[%c0_91, %c0_92] : memref<1x32xf32, #tpu.memory_space<vmem>>, vector<1x32xf32>
    %cst_93 = arith.constant dense<0.000000e+00> : vector<9xf32>
    %129 = vector.multi_reduction <add>, %126, %cst_93 [1] : vector<9x32xf32> to vector<9xf32>
    %130 = vector.shape_cast %129 : vector<9xf32> to vector<9x1xf32>
    %cst_94 = arith.constant 3.200000e+01 : f32
    %131 = vector.broadcast %cst_94 : f32 to vector<9x1xf32>
    %132 = arith.divf %130, %131 : vector<9x1xf32>
    %133 = vector.broadcast %132 : vector<9x1xf32> to vector<9x32xf32>
    %134 = arith.subf %126, %133 : vector<9x32xf32>
    %135 = arith.mulf %134, %134 : vector<9x32xf32>
    %cst_95 = arith.constant dense<0.000000e+00> : vector<9xf32>
    %136 = vector.multi_reduction <add>, %135, %cst_95 [1] : vector<9x32xf32> to vector<9xf32>
    %137 = vector.shape_cast %136 : vector<9xf32> to vector<9x1xf32>
    %cst_96 = arith.constant 3.200000e+01 : f32
    %138 = vector.broadcast %cst_96 : f32 to vector<9x1xf32>
    %139 = arith.divf %137, %138 : vector<9x1xf32>
    %cst_97 = arith.constant 9.99999974E-6 : f32
    %140 = vector.broadcast %cst_97 : f32 to vector<9x1xf32>
    %141 = arith.addf %139, %140 : vector<9x1xf32>
    %142 = math.rsqrt %141 : vector<9x1xf32>
    %143 = vector.broadcast %142 : vector<9x1xf32> to vector<9x32xf32>
    %144 = arith.mulf %134, %143 : vector<9x32xf32>
    %145 = vector.broadcast %127 : vector<1x32xf32> to vector<9x32xf32>
    %146 = arith.mulf %144, %145 : vector<9x32xf32>
    %147 = vector.broadcast %128 : vector<1x32xf32> to vector<9x32xf32>
    %148 = arith.addf %146, %147 : vector<9x32xf32>
    %c0_98 = arith.constant 0 : index
    %c0_99 = arith.constant 0 : index
    %149 = vector.load %arg11[%c0_98, %c0_99] : memref<32x64xf32, #tpu.memory_space<vmem>>, vector<32x64xf32>
    %cst_100 = arith.constant dense<0.000000e+00> : vector<9x64xf32>
    %150 = tpu.matmul %148, %149, %cst_100 {dimension_numbers = #tpu.dot_dimension_numbers<[1], [0], [0], [1], [0, 0, 1, 1], [], []>} : vector<9x32xf32>, vector<32x64xf32>, vector<9x64xf32> -> vector<9x64xf32>
    %c0_101 = arith.constant 0 : index
    %c0_102 = arith.constant 0 : index
    %151 = vector.load %arg12[%c0_101, %c0_102] : memref<1x64xf32, #tpu.memory_space<vmem>>, vector<1x64xf32>
    %152 = vector.broadcast %151 : vector<1x64xf32> to vector<9x64xf32>
    %153 = arith.addf %150, %152 : vector<9x64xf32>
    %cst_103 = arith.constant 5.000000e-01 : f32
    %154 = vector.broadcast %cst_103 : f32 to vector<9x64xf32>
    %155 = arith.mulf %154, %153 : vector<9x64xf32>
    %cst_104 = arith.constant 0.707106769 : f32
    %156 = vector.broadcast %cst_104 : f32 to vector<9x64xf32>
    %157 = arith.mulf %153, %156 : vector<9x64xf32>
    %158 = math.absf %157 : vector<9x64xf32>
    %cst_105 = arith.constant 0.327591091 : f32
    %159 = vector.broadcast %cst_105 : f32 to vector<9x64xf32>
    %160 = arith.mulf %159, %158 : vector<9x64xf32>
    %cst_106 = arith.constant 1.000000e+00 : f32
    %161 = vector.broadcast %cst_106 : f32 to vector<9x64xf32>
    %162 = arith.addf %161, %160 : vector<9x64xf32>
    %cst_107 = arith.constant 1.000000e+00 : f32
    %163 = vector.broadcast %cst_107 : f32 to vector<9x64xf32>
    %164 = arith.divf %163, %162 : vector<9x64xf32>
    %cst_108 = arith.constant 1.06140542 : f32
    %165 = vector.broadcast %cst_108 : f32 to vector<9x64xf32>
    %166 = arith.mulf %165, %164 : vector<9x64xf32>
    %cst_109 = arith.constant -1.45315206 : f32
    %167 = vector.broadcast %cst_109 : f32 to vector<9x64xf32>
    %168 = arith.addf %166, %167 : vector<9x64xf32>
    %169 = arith.mulf %168, %164 : vector<9x64xf32>
    %cst_110 = arith.constant 1.42141378 : f32
    %170 = vector.broadcast %cst_110 : f32 to vector<9x64xf32>
    %171 = arith.addf %169, %170 : vector<9x64xf32>
    %172 = arith.mulf %171, %164 : vector<9x64xf32>
    %cst_111 = arith.constant -0.284496725 : f32
    %173 = vector.broadcast %cst_111 : f32 to vector<9x64xf32>
    %174 = arith.addf %172, %173 : vector<9x64xf32>
    %175 = arith.mulf %174, %164 : vector<9x64xf32>
    %cst_112 = arith.constant 0.254829586 : f32
    %176 = vector.broadcast %cst_112 : f32 to vector<9x64xf32>
    %177 = arith.addf %175, %176 : vector<9x64xf32>
    %178 = arith.mulf %177, %164 : vector<9x64xf32>
    %cst_113 = arith.constant 0.000000e+00 : f32
    %179 = vector.broadcast %cst_113 : f32 to vector<9x64xf32>
    %180 = arith.subf %179, %158 : vector<9x64xf32>
    %181 = arith.mulf %180, %158 : vector<9x64xf32>
    %182 = math.exp %181 : vector<9x64xf32>
    %183 = arith.mulf %178, %182 : vector<9x64xf32>
    %cst_114 = arith.constant 1.000000e+00 : f32
    %184 = vector.broadcast %cst_114 : f32 to vector<9x64xf32>
    %185 = arith.subf %184, %183 : vector<9x64xf32>
    %cst_115 = arith.constant 0.000000e+00 : f32
    %186 = vector.broadcast %cst_115 : f32 to vector<9x64xf32>
    %187 = arith.cmpf oge, %157, %186 : vector<9x64xf32>
    %cst_116 = arith.constant 0.000000e+00 : f32
    %188 = vector.broadcast %cst_116 : f32 to vector<9x64xf32>
    %189 = arith.subf %188, %185 : vector<9x64xf32>
    %190 = arith.select %187, %185, %189 : vector<9x64xi1>, vector<9x64xf32>
    %cst_117 = arith.constant 1.000000e+00 : f32
    %191 = vector.broadcast %cst_117 : f32 to vector<9x64xf32>
    %192 = arith.addf %191, %190 : vector<9x64xf32>
    %193 = arith.mulf %155, %192 : vector<9x64xf32>
    %c0_118 = arith.constant 0 : index
    %c0_119 = arith.constant 0 : index
    %194 = vector.load %arg13[%c0_118, %c0_119] : memref<64x32xf32, #tpu.memory_space<vmem>>, vector<64x32xf32>
    %cst_120 = arith.constant dense<0.000000e+00> : vector<9x32xf32>
    %195 = tpu.matmul %193, %194, %cst_120 {dimension_numbers = #tpu.dot_dimension_numbers<[1], [0], [0], [1], [0, 0, 1, 1], [], []>} : vector<9x64xf32>, vector<64x32xf32>, vector<9x32xf32> -> vector<9x32xf32>
    %196 = arith.addf %126, %195 : vector<9x32xf32>
    %c0_121 = arith.constant 0 : index
    %c0_122 = arith.constant 0 : index
    %197 = vector.load %arg14[%c0_121, %c0_122] : memref<1x32xf32, #tpu.memory_space<vmem>>, vector<1x32xf32>
    %198 = vector.broadcast %197 : vector<1x32xf32> to vector<9x32xf32>
    %199 = arith.addf %196, %198 : vector<9x32xf32>
    %c0_123 = arith.constant 0 : index
    %c0_124 = arith.constant 0 : index
    %200 = vector.load %arg15[%c0_123, %c0_124] : memref<1x32xf32, #tpu.memory_space<vmem>>, vector<1x32xf32>
    %c0_125 = arith.constant 0 : index
    %c0_126 = arith.constant 0 : index
    %201 = vector.load %arg16[%c0_125, %c0_126] : memref<1x32xf32, #tpu.memory_space<vmem>>, vector<1x32xf32>
    %cst_127 = arith.constant dense<0.000000e+00> : vector<9xf32>
    %202 = vector.multi_reduction <add>, %199, %cst_127 [1] : vector<9x32xf32> to vector<9xf32>
    %203 = vector.shape_cast %202 : vector<9xf32> to vector<9x1xf32>
    %cst_128 = arith.constant 3.200000e+01 : f32
    %204 = vector.broadcast %cst_128 : f32 to vector<9x1xf32>
    %205 = arith.divf %203, %204 : vector<9x1xf32>
    %206 = vector.broadcast %205 : vector<9x1xf32> to vector<9x32xf32>
    %207 = arith.subf %199, %206 : vector<9x32xf32>
    %208 = arith.mulf %207, %207 : vector<9x32xf32>
    %cst_129 = arith.constant dense<0.000000e+00> : vector<9xf32>
    %209 = vector.multi_reduction <add>, %208, %cst_129 [1] : vector<9x32xf32> to vector<9xf32>
    %210 = vector.shape_cast %209 : vector<9xf32> to vector<9x1xf32>
    %cst_130 = arith.constant 3.200000e+01 : f32
    %211 = vector.broadcast %cst_130 : f32 to vector<9x1xf32>
    %212 = arith.divf %210, %211 : vector<9x1xf32>
    %cst_131 = arith.constant 9.99999974E-6 : f32
    %213 = vector.broadcast %cst_131 : f32 to vector<9x1xf32>
    %214 = arith.addf %212, %213 : vector<9x1xf32>
    %215 = math.rsqrt %214 : vector<9x1xf32>
    %216 = vector.broadcast %215 : vector<9x1xf32> to vector<9x32xf32>
    %217 = arith.mulf %207, %216 : vector<9x32xf32>
    %218 = vector.broadcast %200 : vector<1x32xf32> to vector<9x32xf32>
    %219 = arith.mulf %217, %218 : vector<9x32xf32>
    %220 = vector.broadcast %201 : vector<1x32xf32> to vector<9x32xf32>
    %221 = arith.addf %219, %220 : vector<9x32xf32>
    %c0_132 = arith.constant 0 : index
    %c0_133 = arith.constant 0 : index
    %c0_134 = arith.constant 0 : index
    %222 = vector.load %arg17[%c0_132, %c0_133, %c0_134] : memref<1x9x32xf32, #tpu.memory_space<vmem>>, vector<1x9x32xf32>
    %223 = vector.shape_cast %222 : vector<1x9x32xf32> to vector<9x32xf32>
    %224 = vector.shape_cast %221 : vector<9x32xf32> to vector<1x9x32xf32>
    tpu.vector_store %arg17[%c0_132, %c0_133, %c0_134], %224 {strides = array<i32>} : memref<1x9x32xf32, #tpu.memory_space<vmem>>, vector<1x9x32xf32>,
    return
  }
  func.func @transform_0(%arg0: i32) -> (i32, i32, i32) {
    %c0_i32 = arith.constant 0 : i32
    %c0_i32_0 = arith.constant 0 : i32
    %c0_i32_1 = arith.constant 0 : i32
    return %arg0, %c0_i32, %c0_i32_0 : i32, i32, i32
  }
  func.func @transform_1(%arg0: i32) -> (i32, i32) {
    %c0_i32 = arith.constant 0 : i32
    %c0_i32_0 = arith.constant 0 : i32
    %c0_i32_1 = arith.constant 0 : i32
    return %c0_i32, %c0_i32_0 : i32, i32
  }
  func.func @transform_2(%arg0: i32) -> (i32, i32) {
    %c0_i32 = arith.constant 0 : i32
    %c0_i32_0 = arith.constant 0 : i32
    %c0_i32_1 = arith.constant 0 : i32
    return %c0_i32, %c0_i32_0 : i32, i32
  }
  func.func @transform_3(%arg0: i32) -> (i32, i32, i32) {
    %c0_i32 = arith.constant 0 : i32
    %c0_i32_0 = arith.constant 0 : i32
    %c0_i32_1 = arith.constant 0 : i32
    %c0_i32_2 = arith.constant 0 : i32
    return %c0_i32, %c0_i32_0, %c0_i32_1 : i32, i32, i32
  }
  func.func @transform_4(%arg0: i32) -> (i32, i32, i32) {
    %c0_i32 = arith.constant 0 : i32
    %c0_i32_0 = arith.constant 0 : i32
    %c0_i32_1 = arith.constant 0 : i32
    %c0_i32_2 = arith.constant 0 : i32
    return %c0_i32, %c0_i32_0, %c0_i32_1 : i32, i32, i32
  }
  func.func @transform_5(%arg0: i32) -> (i32, i32, i32) {
    %c0_i32 = arith.constant 0 : i32
    %c0_i32_0 = arith.constant 0 : i32
    %c0_i32_1 = arith.constant 0 : i32
    %c0_i32_2 = arith.constant 0 : i32
    return %c0_i32, %c0_i32_0, %c0_i32_1 : i32, i32, i32
  }
  func.func @transform_6(%arg0: i32) -> (i32, i32, i32) {
    %c0_i32 = arith.constant 0 : i32
    %c0_i32_0 = arith.constant 0 : i32
    %c0_i32_1 = arith.constant 0 : i32
    %c0_i32_2 = arith.constant 0 : i32
    return %c0_i32, %c0_i32_0, %c0_i32_1 : i32, i32, i32
  }
  func.func @transform_7(%arg0: i32) -> (i32, i32) {
    %c0_i32 = arith.constant 0 : i32
    %c0_i32_0 = arith.constant 0 : i32
    %c0_i32_1 = arith.constant 0 : i32
    return %c0_i32, %c0_i32_0 : i32, i32
  }
  func.func @transform_8(%arg0: i32) -> (i32, i32) {
    %c0_i32 = arith.constant 0 : i32
    %c0_i32_0 = arith.constant 0 : i32
    %c0_i32_1 = arith.constant 0 : i32
    return %c0_i32, %c0_i32_0 : i32, i32
  }
  func.func @transform_9(%arg0: i32) -> (i32, i32) {
    %c0_i32 = arith.constant 0 : i32
    %c0_i32_0 = arith.constant 0 : i32
    %c0_i32_1 = arith.constant 0 : i32
    return %c0_i32, %c0_i32_0 : i32, i32
  }
  func.func @transform_10(%arg0: i32) -> (i32, i32) {
    %c0_i32 = arith.constant 0 : i32
    %c0_i32_0 = arith.constant 0 : i32
    %c0_i32_1 = arith.constant 0 : i32
    return %c0_i32, %c0_i32_0 : i32, i32
  }
  func.func @transform_11(%arg0: i32) -> (i32, i32) {
    %c0_i32 = arith.constant 0 : i32
    %c0_i32_0 = arith.constant 0 : i32
    %c0_i32_1 = arith.constant 0 : i32
    return %c0_i32, %c0_i32_0 : i32, i32
  }
  func.func @transform_12(%arg0: i32) -> (i32, i32) {
    %c0_i32 = arith.constant 0 : i32
    %c0_i32_0 = arith.constant 0 : i32
    %c0_i32_1 = arith.constant 0 : i32
    return %c0_i32, %c0_i32_0 : i32, i32
  }
  func.func @transform_13(%arg0: i32) -> (i32, i32) {
    %c0_i32 = arith.constant 0 : i32
    %c0_i32_0 = arith.constant 0 : i32
    %c0_i32_1 = arith.constant 0 : i32
    return %c0_i32, %c0_i32_0 : i32, i32
  }
  func.func @transform_14(%arg0: i32) -> (i32, i32) {
    %c0_i32 = arith.constant 0 : i32
    %c0_i32_0 = arith.constant 0 : i32
    %c0_i32_1 = arith.constant 0 : i32
    return %c0_i32, %c0_i32_0 : i32, i32
  }
  func.func @transform_15(%arg0: i32) -> (i32, i32) {
    %c0_i32 = arith.constant 0 : i32
    %c0_i32_0 = arith.constant 0 : i32
    %c0_i32_1 = arith.constant 0 : i32
    return %c0_i32, %c0_i32_0 : i32, i32
  }
  func.func @transform_16(%arg0: i32) -> (i32, i32, i32) {
    %c0_i32 = arith.constant 0 : i32
    %c0_i32_0 = arith.constant 0 : i32
    %c0_i32_1 = arith.constant 0 : i32
    return %arg0, %c0_i32, %c0_i32_0 : i32, i32, i32
  }
}

</mosaic_0001>

<bundles_post_ra>
// kernel: transformer_forward.1
= control target key start
LH: loop header
LB: loop body
LE: loop exit
PB: predicated region body
PF: predicated region fallthrough
CT: control target
= control target key end

     0   :  { %s3876_s21 = smov 0   ;;  %s4295_s0 = inlined_call_operand.vmem [shape: f32[2,9,32], index: 0, kind: input, shape index: {}]   ;;  %s4296_s1 = inlined_call_operand.vmem [shape: f32[1,32], index: 1, kind: input, shape index: {}]   ;;  %s4297_s2 = inlined_call_operand.vmem [shape: f32[1,32], index: 2, kind: input, shape index: {}]   ;;  %s4298_s3 = inlined_call_operand.vmem [shape: f32[4,32,8], index: 3, kind: input, shape index: {}]   ;;  %s4299_s4 = inlined_call_operand.vmem [shape: f32[4,32,8], index: 4, kind: input, shape index: {}]   ;;  %s4300_s5 = inlined_call_operand.vmem [shape: f32[4,32,8], index: 5, kind: input, shape index: {}]   ;;  %s4301_s6 = inlined_call_operand.vmem [shape: f32[4,8,32], index: 6, kind: input, shape index: {}]   ;;  %s4302_s7 = inlined_call_operand.vmem [shape: f32[1,32], index: 7, kind: input, shape index: {}]   ;;  %s4303_s8 = inlined_call_operand.vmem [shape: f32[1,32], index: 8, kind: input, shape index: {}]   ;;  %s4304_s9 = inlined_call_operand.vmem [shape: f32[1,32], index: 9, kind: input, shape index: {}]   ;;  %s4305_s10 = inlined_call_operand.vmem [shape: f32[32,64], index: 10, kind: input, shape index: {}]   ;;  %s4306_s11 = inlined_call_operand.vmem [shape: f32[1,64], index: 11, kind: input, shape index: {}]   ;;  %s4307_s12 = inlined_call_operand.vmem [shape: f32[64,32], index: 12, kind: input, shape index: {}]   ;;  %s4308_s13 = inlined_call_operand.vmem [shape: f32[1,32], index: 13, kind: input, shape index: {}]   ;;  %s4309_s14 = inlined_call_operand.vmem [shape: f32[1,32], index: 14, kind: input, shape index: {}]   ;;  %s4310_s15 = inlined_call_operand.vmem [shape: f32[1,32], index: 15, kind: input, shape index: {}]   ;;  %s4311_s16 = inlined_call_operand.vmem [shape: f32[2,9,32], index: 16, kind: output, shape index: {}]  }
   0x1   :  { %4312 = sst [smem:[#allocation2_spill]] %s4295_s0 }
   0x2 LB: > { %s3050_s22 = sadd.s32 4294967295, %s3788_s21   ;;  %p3054_p0 = scmp.ge.s32.totalorder %s3788_s21, 1  ;;  %s3788_s21 = sphi %s3876_s21, %s26_s21  }
   0x3   : > { %p462_p1 = scmp.lt.s32.totalorder %s3788_s21, 3 }
   0x5   : > { %p463_p2 = pnand %p3054_p0, %p462_p1 }
   0x6   : > { %p512_p3 = scmp.lt.s32.totalorder (!%p463_p2), %s3050_s22, 1  ;;  %vm526_vm0 = vcmask (!%p463_p2), 261120   ;;  %s4313_s26 = sld [smem:[#allocation2_spill]] (!%p463_p2)  ;;  %vm530_vm1 = vcmask (!%p463_p2), 253952   ;;  %v580_v14 = vld [vmem:[%s4298_s3] sm:$0xff] (!%p463_p2)  ;;  %v581_v15 = vld [vmem:[%s4298_s3 + $0x8] sm:$0xff] (!%p463_p2) }
   0x7   : > { %466 = sbr.rel (%p463_p2) target bundleno = 5534 (0x159e), region = 84  ;;  %v3545_v16 = vpack.c.bf16 (!%p463_p2), %v581_v15, %v580_v14  ;;  %v665_v17 = vld [vmem:[%s4299_s4] sm:$0xff] (!%p463_p2)  ;;  %v666_v18 = vld [vmem:[%s4299_s4 + $0x8] sm:$0xff] (!%p463_p2)  ;;  %v582_v20 = vld [vmem:[%s4298_s3 + $0x10] sm:$0xff] (!%p463_p2)  ;;  %vm823_vm2 = vcmask (!%p463_p2), 64512   ;;  %vm941_vm4 = vcmask (!%p463_p2), 1040384  }
   0x8   : > { %v3553_v19 = vpack.c.bf16 (!%p463_p2), %v666_v18, %v665_v17  ;;  %v583_v21 = vld [vmem:[%s4298_s3 + $0x18] sm:$0xff] (!%p463_p2)  ;;  %v667_v23 = vld [vmem:[%s4299_s4 + $0x10] sm:$0xff] (!%p463_p2)  ;;  %v744_v26 = vld [vmem:[%s4300_s5] sm:$0xff] (!%p463_p2)  ;;  %vm3790_vm5 = vmmov (!%p463_p2), 1   ;;  %vm915_vm7 = vcmask (!%p463_p2), 65536   ;;  %vm911_vm8 = vcmask (!%p463_p2), 72704  }
   0x9   : > { %3546 = vmatprep.subr.bf16.mxu0 (!%p463_p2), %v3545_v16  ;;  %v3549_v22 = vpack.c.bf16 (!%p463_p2), %v583_v21, %v582_v20  ;;  %v668_v24 = vld [vmem:[%s4299_s4 + $0x18] sm:$0xff] (!%p463_p2)  ;;  %v745_v27 = vld [vmem:[%s4300_s5 + $0x8] sm:$0xff] (!%p463_p2)  ;;  %v3059_v36 = vld [vmem:[%s4296_s1] ss:$0 sm:$0xff] (!%p463_p2)  ;;  %vm2856_vm11 = vcmask (!%p463_p2), 523264  }
   0xa   : > { %3548 = vmatpush3.bf16.msra.mxu0 (!%p463_p2), %v3545_v16  ;;  %3554 = vmatprep.subr.bf16.mxu1 (!%p463_p2), %v3553_v19  ;;  %v3557_v25 = vpack.c.bf16 (!%p463_p2), %v668_v24, %v667_v23  ;;  %v3561_v28 = vpack.c.bf16 (!%p463_p2), %v745_v27, %v744_v26  ;;  %v3060_v38 = vld [vmem:[%s4297_s2] ss:$0 sm:$0xff] (!%p463_p2)  ;;  %v746_v43 = vld [vmem:[%s4300_s5 + $0x10] sm:$0xff] (!%p463_p2)  ;;  %v747_v44 = vld [vmem:[%s4300_s5 + $0x18] sm:$0xff] (!%p463_p2) }
   0xb   : > { %3556 = vmatpush3.bf16.msra.mxu1 (!%p463_p2), %v3553_v19  ;;  %3550 = vmatprep.subr.bf16.mxu0 (!%p463_p2), %v3549_v22  ;;  %v3565_v47 = vpack.c.bf16 (!%p463_p2), %v747_v44, %v746_v43  ;;  %v3083_v48 = vld [vmem:[%s4299_s4 + $0x20] sm:$0xff] (!%p463_p2)  ;;  %v3084_v49 = vld [vmem:[%s4299_s4 + $0x28] sm:$0xff] (!%p463_p2)  ;;  %vm3970_vm3 = vmpackc.low (!%p463_p2), %vm823_vm2, %vm823_vm2 }
   0xc   : > { %3558 = vmatprep.subr.bf16.mxu1 (!%p463_p2), %v3557_v25  ;;  %v3589_v56 = vpack.c.bf16 (!%p463_p2), %v3084_v49, %v3083_v48  ;;  %v3085_v57 = vld [vmem:[%s4299_s4 + $0x30] sm:$0xff] (!%p463_p2)  ;;  %v3086_v58 = vld [vmem:[%s4299_s4 + $0x38] sm:$0xff] (!%p463_p2)  ;;  %vm3985_vm6 = vmpackc.low (!%p463_p2), %vm941_vm4, %vm3790_vm5 }
   0xd   : > { %v3593_v63 = vpack.c.bf16 (!%p463_p2), %v3086_v58, %v3085_v57  ;;  %v1020_v19 = vld [vmem:[%s4301_s6] sm:$0xff] (!%p463_p2)  ;;  %v3078_v27 = vld [vmem:[%s4298_s3 + $0x28] sm:$0xff] (!%p463_p2) }
   0xe   : > { %s4319_s22 = smov (!%p512_p3, %s3050_s22), 1  ;;  %3552 = vmatpush3.bf16.msra.mxu0 %v3549_v22  ;;  %v3077_v26 = vld [vmem:[%s4298_s3 + $0x20] sm:$0xff] }
   0xf   : > { %s3173_s23 = sshll.u32 %s4319_s22, 4  ;;  %3560 = vmatpush3.bf16.msra.mxu1 %v3557_v25  ;;  %3562 = vmatprep.subr.bf16.mxu0 %v3561_v28 }
  0x10   : > { %s516_s27 = scalar_lea.vmem %s4313_s26, %s3173_s23  ;;  %s521_s17 = scalar_lea.vmem %s4311_s16, %s3173_s23 }
  0x11   : > { %v3892_v0 = vld [vmem:[%s516_s27] sm:$0xff]  ;;  %v3894_v1 = vld [vmem:[%s516_s27 + $0x8] sm:$0x1] }
  0x12   : > { %v527_v2 = vsel %vm526_vm0, %v3892_v0, 0.0  ;;  %v531_v3 = vsel %vm530_vm1, %v3894_v1, 0.0 }
  0x13   : > { %528 = vadd.xlane.f32.xlu0 %v527_v2 }
  0x17   : > { %532 = vadd.xlane.f32.xlu0 %v531_v3 }
  0xa0   : > { %v529_v4 = vpop.xlane.xlu0 %528 }
  0xa1   : > { %v535_v5 = vmul.f32 0.03125, %v529_v4 }
  0xa3   : > { %v537_v6 = vsub.f32 %v3892_v0, %v535_v5 }
  0xa4   : > { %v533_v7 = vpop.xlane.xlu0 %532 }
  0xa5   : > { %v536_v8 = vmul.f32 0.03125, %v533_v7  ;;  %v539_v9 = vmul.f32 %v537_v6, %v537_v6 }
  0xa7   : > { %v538_v10 = vsub.f32 %v3894_v1, %v536_v8  ;;  %v541_v11 = vsel %vm526_vm0, %v539_v9, 0.0 }
  0xa8   : > { %542 = vadd.xlane.f32.xlu1 %v541_v11 }
  0xa9   : > { %v540_v12 = vmul.f32 %v538_v10, %v538_v10 }
  0xab   : > { %v544_v13 = vsel %vm530_vm1, %v540_v12, 0.0 }
  0xac   : > { %545 = vadd.xlane.f32.xlu1 %v544_v13 }
 0x135   : > { %v543_v29 = vpop.xlane.xlu1 %542 }
 0x136   : > { %v547_v30 = vmul.f32 0.03125, %v543_v29  ;;  %v3079_v29 = vld [vmem:[%s4298_s3 + $0x30] sm:$0xff] }
 0x138   : > { %v549_v31 = vadd.f32 1e-05, %v547_v30  ;;  %v3080_v30 = vld [vmem:[%s4298_s3 + $0x38] sm:$0xff] }
 0x139   : > { %v546_v32 = vpop.xlane.xlu1 %545 }
 0x13a   : > { %3730 = vrsqrt.f32 %v549_v31  ;;  %v548_v33 = vmul.f32 0.03125, %v546_v32 }
 0x13c   : > { %v550_v34 = vadd.f32 1e-05, %v548_v33  ;;  %v3585_v33 = vpack.c.bf16 %v3080_v30, %v3079_v29 }
 0x13e   : > { %3732 = vrsqrt.f32 %v550_v34  ;;  %v3089_v34 = vld [vmem:[%s4300_s5 + $0x20] sm:$0xff] }
 0x144   : > { %v3731_v35 = vpop.eup %3730 }
 0x145   : > { %v553_v37 = vmul.f32 %v3731_v35, %v537_v6  ;;  %v3090_v35 = vld [vmem:[%s4300_s5 + $0x28] sm:$0xff] }
 0x147   : > { %v561_v39 = vmul.f32 %v3059_v36, %v553_v37  ;;  %v3091_v37 = vld [vmem:[%s4300_s5 + $0x30] sm:$0xff] }
 0x148   : > { %v3733_v40 = vpop.eup %3732 }
 0x149   : > { %v3940_v41 = vadd.f32 %v3060_v38, %v561_v39  ;;  %v554_v42 = vmul.f32 %v3733_v40, %v538_v10 }
 0x14b   : > { %v562_v45 = vmul.f32 %v3059_v36, %v554_v42  ;;  %3315 = vmatprep.mubr.msk.f32.mxu0 %vm526_vm0, %v3940_v41  ;;  %3326 = vmatprep.mubr.msk.f32.mxu1 %vm526_vm0, %v3940_v41  ;;  %v3597_v36 = vpack.c.bf16 %v3090_v35, %v3089_v34 }
 0x14d   : > { %v3952_v46 = vadd.f32 %v3060_v38, %v562_v45  ;;  %v3092_v38 = vld [vmem:[%s4300_s5 + $0x38] sm:$0xff] }
 0x14e   : > { %v3601_v39 = vpack.c.bf16 %v3092_v38, %v3091_v37 }
 0x14f   : > { %3316 = vmatmul.mubr.msk.f32.vlgmr.msra.gmra.mrb[0].mxu0 %vm526_vm0, %v3952_v46  ;;  %3327 = vmatmul.mubr.msk.f32.vlgmr.msra.gmra.mrb[0].mxu1 %vm526_vm0, %v3952_v46 }
 0x150   : > { %3564 = vmatpush3.bf16.msra.mxu0 %v3561_v28  ;;  %3337 = vmatprep.mubr.msk.f32.mxu0 %vm526_vm0, %v3940_v41  ;;  %v3581_v28 = vpack.c.bf16 %v3078_v27, %v3077_v26  ;;  %v3114_v26 = vld [vmem:[%s4299_s4 + $0x58] sm:$0xff] }
 0x151   : > { %3566 = vmatprep.subr.bf16.mxu0 %v3565_v47 }
 0x154   : > { %3568 = vmatpush3.bf16.msra.mxu0 %v3565_v47 }
 0x157   : > { %3338 = vmatmul.mubr.msk.f32.vlgmr.msra.gmra.mrb[2].mxu0 %vm526_vm0, %v3952_v46 }
 0x222   : > { %v3317_v50 = vpop.f32.mrb[0].mxu0  ;;  %v3328_v51 = vpop.f32.mrb[0].mxu1 }
 0x223   : > { %v656_v52 = vpop.f32.mrb[1].mxu0  ;;  %v735_v53 = vpop.f32.mrb[1].mxu1 }
 0x224   : > { %v3569_v55 = vpack.c.bf16 %v3328_v51, %v735_v53  ;;  %3344 = vmatprep.mubr.msk.f32.mxu1 %vm823_vm2, %v656_v52 }
 0x226   : > { %3571 = vmatprep.subr.msk.bf16.mxu1 %vm3970_vm3, %v3569_v55 }
 0x227   : > { %3574 = vmatpush3.bf16.xpose.msk.msra.mxu1 %vm3970_vm3, %v3569_v55 }
 0x228   : > { %3590 = vmatprep.subr.bf16.mxu1 %v3589_v56 }
 0x22a   : > { %v3339_v59 = vpop.f32.mrb[2].mxu0 }
 0x22b   : > { %v814_v60 = vpop.f32.mrb[3].mxu0 }
 0x22c   : > { %v3575_v62 = vpack.c.bf16 %v3339_v59, %v814_v60 }
 0x22e   : > { %3577 = vmatprep.subr.msk.bf16.mxu0 %vm3985_vm6, %v3575_v62  ;;  %3345 = vmatmul.mubr.msk.f32.vlgmr.msra.gmra.mrb[2].mxu1 %vm823_vm2, %v3317_v50 }
 0x22f   : > { %3580 = vmatpush3.bf16.msk.msra.mxu0 %vm3985_vm6, %v3575_v62  ;;  %3592 = vmatpush3.bf16.msra.mxu1 %v3589_v56 }
 0x230   : > { %3378 = vmatprep.mubr.msk.f32.mxu1 %vm526_vm0, %v3940_v41  ;;  %3594 = vmatprep.subr.bf16.mxu1 %v3593_v63 }
 0x231   : > { %3354 = vmatprep.subr.mxu0 %v1020_v19 }
 0x233   : > { %3596 = vmatpush3.bf16.msra.mxu1 %v3593_v63 }
 0x236   : > { %3379 = vmatmul.mubr.msk.f32.vlgmr.msra.gmra.mrb[4].mxu1 %vm526_vm0, %v3952_v46 }
 0x301   : > { %v3346_v2 = vpop.f32.mrb[2].mxu1 }
 0x302   : > { %v902_v3 = vpop.f32.mrb[3].mxu1  ;;  %v916_v4 = vsel %vm915_vm7, %v3346_v2, -inf }
 0x303   : > { %917 = vmax.xlane.f32.xlu1 %v916_v4  ;;  %v912_v5 = vsel %vm911_vm8, %v902_v3, -inf  ;;  %v3106_v4 = vld [vmem:[%s4298_s3 + $0x48] sm:$0xff] }
 0x304   : > { %913 = vmax.xlane.f32.xlu0 %v912_v5 }
 0x309   : > { %v3380_v6 = vpop.f32.mrb[4].mxu1 }
 0x30a   : > { %v1255_v7 = vpop.f32.mrb[5].mxu1 }
 0x30b   : > { %v3605_v8 = vpack.c.bf16 %v3380_v6, %v1255_v7  ;;  %v3102_v6 = vld [vmem:[%s4301_s6 + $0x8] sm:$0xff] }
 0x30d   : > { %3607 = vmatprep.subr.msk.bf16.mxu1 %vm3970_vm3, %v3605_v8 }
 0x30e   : > { %3610 = vmatpush3.bf16.xpose.msk.msra.mxu1 %vm3970_vm3, %v3605_v8 }
 0x30f   : > { %3406 = vmatprep.subr.mxu1 %v3102_v6 }
 0x390   : > { %v918_v9 = vpop.xlane.xlu1 %917 }
 0x391   : > { %v920_v10 = vsub.f32 %v3346_v2, %v918_v9  ;;  %v914_v11 = vpop.xlane.xlu0 %913 }
 0x392   : > { %v919_v12 = vsub.f32 %v902_v3, %v914_v11  ;;  %v3105_v3 = vld [vmem:[%s4298_s3 + $0x40] sm:$0xff]  ;;  %v3108_v11 = vld [vmem:[%s4298_s3 + $0x58] sm:$0xff] }
 0x393   : > { %v923_v13 = vmul.f32 1.442695, %v920_v10  ;;  %v3617_v5 = vpack.c.bf16 %v3106_v4, %v3105_v3  ;;  %v3107_v10 = vld [vmem:[%s4298_s3 + $0x50] sm:$0xff]  ;;  %v3136_v4 = vld [vmem:[%s4298_s3 + $0x78] sm:$0xff] }
 0x394   : > { %v921_v14 = vmul.f32 1.442695, %v919_v12  ;;  %v3135_v3 = vld [vmem:[%s4298_s3 + $0x70] sm:$0xff] }
 0x395   : > { %3734 = vpow2.f32 %v923_v13 }
 0x396   : > { %3736 = vpow2.f32 %v921_v14 }
 0x39f   : > { %v3735_v15 = vpop.eup %3734 }
 0x3a0   : > { %v3737_v16 = vpop.eup %3736  ;;  %v928_v17 = vsel %vm915_vm7, %v3735_v15, 0.0 }
 0x3a1   : > { %929 = vadd.xlane.f32.xlu1 %v928_v17  ;;  %v925_v18 = vsel %vm911_vm8, %v3737_v16, 0.0  ;;  %v3118_v17 = vld [vmem:[%s4300_s5 + $0x48] sm:$0xff] }
 0x3a2   : > { %926 = vadd.xlane.f32.xlu0 %v925_v18 }
 0x42e   : > { %v930_v20 = vpop.xlane.xlu1 %929 }
 0x42f   : > { %3738 = vrcp.f32 %v930_v20  ;;  %v927_v21 = vpop.xlane.xlu0 %926  ;;  %v3120_v20 = vld [vmem:[%s4300_s5 + $0x58] sm:$0xff] }
 0x430   : > { %3740 = vrcp.f32 %v927_v21 }
 0x439   : > { %v3739_v22 = vpop.eup %3738 }
 0x43a   : > { %v3741_v23 = vpop.eup %3740  ;;  %v934_v25 = vmul.f32 %v3739_v22, %v3735_v15  ;;  %v3621_v15 = vpack.c.bf16 %v3108_v11, %v3107_v10  ;;  %v3111_v22 = vld [vmem:[%s4299_s4 + $0x40] sm:$0xff]  ;;  %v3146_v10 = vld [vmem:[%s4300_s5 + $0x68] sm:$0xff] }
 0x43b   : > { %v933_v24 = vmul.f32 %v3741_v23, %v3737_v16  ;;  %v3117_v16 = vld [vmem:[%s4300_s5 + $0x40] sm:$0xff]  ;;  %v3112_v23 = vld [vmem:[%s4299_s4 + $0x48] sm:$0xff] }
 0x43c   : > { %v3633_v18 = vpack.c.bf16 %v3118_v17, %v3117_v16  ;;  %v3140_v16 = vld [vmem:[%s4299_s4 + $0x68] sm:$0xff] }
 0x43d   : > { %3351 = vmatprep.mubr.msk.f32.mxu0 %vm911_vm8, %v933_v24  ;;  %v3625_v24 = vpack.c.bf16 %v3112_v23, %v3111_v22 }
 0x43e   : > { %3352 = vmatmul.mubr.msk.f32.vlgmr.msra.gmra.mrb[4].mxu0 %vm911_vm8, %v934_v25  ;;  %v3113_v25 = vld [vmem:[%s4299_s4 + $0x50] sm:$0xff] }
 0x43f   : > { %3355 = vmatpush3.msra.mxu0 %v1020_v19  ;;  %v3119_v19 = vld [vmem:[%s4300_s5 + $0x50] sm:$0xff]  ;;  %v3629_v29 = vpack.c.bf16 %v3114_v26, %v3113_v25 }
 0x440   : > { %3582 = vmatprep.subr.bf16.mxu0 %v3581_v28  ;;  %v3637_v21 = vpack.c.bf16 %v3120_v20, %v3119_v19  ;;  %v3142_v19 = vld [vmem:[%s4299_s4 + $0x78] sm:$0xff] }
 0x511   : > { %v3353_v31 = vpop.f32.mrb[4].mxu0 }
 0x512   : > { %v1011_v32 = vpop.f32.mrb[5].mxu0 }
 0x513   : > { %3356 = vmatprep.mubr.msk.f32.mxu0 %vm823_vm2, %v1011_v32 }
 0x514   : > { %3357 = vmatmul.mubr.msk.f32.vlgmr.msra.gmra.mrb[6].mxu0 %vm823_vm2, %v3353_v31 }
 0x515   : > { %3584 = vmatpush3.bf16.msra.mxu0 %v3581_v28  ;;  %3367 = vmatprep.mubr.msk.f32.mxu0 %vm526_vm0, %v3940_v41 }
 0x516   : > { %3586 = vmatprep.subr.bf16.mxu0 %v3585_v33 }
 0x519   : > { %3588 = vmatpush3.bf16.msra.mxu0 %v3585_v33 }
 0x51a   : > { %3598 = vmatprep.subr.bf16.mxu0 %v3597_v36 }
 0x51c   : > { %3368 = vmatmul.mubr.msk.f32.vlgmr.msra.gmra.mrb[8].mxu0 %vm526_vm0, %v3952_v46 }
 0x51d   : > { %3600 = vmatpush3.bf16.msra.mxu0 %v3597_v36  ;;  %3389 = vmatprep.mubr.msk.f32.mxu0 %vm526_vm0, %v3940_v41 }
 0x51e   : > { %3602 = vmatprep.subr.bf16.mxu0 %v3601_v39 }
 0x521   : > { %3604 = vmatpush3.bf16.msra.mxu0 %v3601_v39 }
 0x524   : > { %3390 = vmatmul.mubr.msk.f32.vlgmr.msra.gmra.mrb[10].mxu0 %vm526_vm0, %v3952_v46 }
 0x5e7   : > { %v4045_v40 = vpop.f32.mrb[6].mxu0 }
 0x5e8   : > { %v4047_v42 = vpop.f32.mrb[7].mxu0 }
 0x5ef   : > { %v3369_v43 = vpop.f32.mrb[8].mxu0 }
 0x5f0   : > { %v1175_v44 = vpop.f32.mrb[9].mxu0 }
 0x5f1   : > { %3396 = vmatprep.mubr.msk.f32.mxu1 %vm823_vm2, %v1175_v44 }
 0x5f2   : > { %3397 = vmatmul.mubr.msk.f32.vlgmr.msra.gmra.mrb[6].mxu1 %vm823_vm2, %v3369_v43 }
 0x5f3   : > { %3407 = vmatpush3.msra.mxu1 %v3102_v6 }
 0x5f4   : > { %3626 = vmatprep.subr.bf16.mxu1 %v3625_v24 }
 0x5f7   : > { %v3391_v45 = vpop.f32.mrb[10].mxu0 }
 0x5f8   : > { %v1335_v47 = vpop.f32.mrb[11].mxu0 }
 0x5f9   : > { %v3611_v48 = vpack.c.bf16 %v3391_v45, %v1335_v47 }
 0x5fb   : > { %3613 = vmatprep.subr.msk.bf16.mxu0 %vm3985_vm6, %v3611_v48 }
 0x5fc   : > { %3616 = vmatpush3.bf16.msk.msra.mxu0 %vm3985_vm6, %v3611_v48 }
 0x5fd   : > { %3618 = vmatprep.subr.bf16.mxu0 %v3617_v5 }
 0x6c5   : > { %v3398_v49 = vpop.f32.mrb[6].mxu1 }
 0x6c6   : > { %v1422_v50 = vpop.f32.mrb[7].mxu1  ;;  %v1434_v51 = vsel %vm915_vm7, %v3398_v49, -inf }
 0x6c7   : > { %1435 = vmax.xlane.f32.xlu1 %v1434_v51  ;;  %v1431_v52 = vsel %vm911_vm8, %v1422_v50, -inf }
 0x6c8   : > { %1432 = vmax.xlane.f32.xlu0 %v1431_v52 }
 0x754   : > { %v1436_v53 = vpop.xlane.xlu1 %1435 }
 0x755   : > { %v1438_v55 = vsub.f32 %v3398_v49, %v1436_v53  ;;  %v1433_v56 = vpop.xlane.xlu0 %1432 }
 0x756   : > { %v1437_v57 = vsub.f32 %v1422_v50, %v1433_v56 }
 0x757   : > { %v1441_v58 = vmul.f32 1.442695, %v1438_v55 }
 0x758   : > { %v1439_v59 = vmul.f32 1.442695, %v1437_v57  ;;  %v3133_v57 = vld [vmem:[%s4298_s3 + $0x60] sm:$0xff] }
 0x759   : > { %3742 = vpow2.f32 %v1441_v58  ;;  %v3134_v58 = vld [vmem:[%s4298_s3 + $0x68] sm:$0xff] }
 0x75a   : > { %3744 = vpow2.f32 %v1439_v59  ;;  %v3653_v59 = vpack.c.bf16 %v3134_v58, %v3133_v57 }
 0x763   : > { %v3743_v60 = vpop.eup %3742 }
 0x764   : > { %v3745_v62 = vpop.eup %3744  ;;  %v1446_v63 = vsel %vm915_vm7, %v3743_v60, 0.0 }
 0x765   : > { %1447 = vadd.xlane.f32.xlu1 %v1446_v63  ;;  %v1443_v2 = vsel %vm911_vm8, %v3745_v62, 0.0 }
 0x766   : > { %1444 = vadd.xlane.f32.xlu0 %v1443_v2 }
 0x7f2   : > { %v1448_v7 = vpop.xlane.xlu1 %1447 }
 0x7f3   : > { %3746 = vrcp.f32 %v1448_v7  ;;  %v1445_v8 = vpop.xlane.xlu0 %1444 }
 0x7f4   : > { %3748 = vrcp.f32 %v1445_v8  ;;  %v3657_v8 = vpack.c.bf16 %v3136_v4, %v3135_v3 }
 0x7fd   : > { %v3747_v9 = vpop.eup %3746 }
 0x7fe   : > { %v3749_v12 = vpop.eup %3748  ;;  %v1452_v14 = vmul.f32 %v3747_v9, %v3743_v60  ;;  %v3130_v60 = vld [vmem:[%s4301_s6 + $0x10] sm:$0xff]  ;;  %v3145_v9 = vld [vmem:[%s4300_s5 + $0x60] sm:$0xff] }
 0x7ff   : > { %v1451_v13 = vmul.f32 %v3749_v12, %v3745_v62  ;;  %v3669_v11 = vpack.c.bf16 %v3146_v10, %v3145_v9  ;;  %v3147_v12 = vld [vmem:[%s4300_s5 + $0x70] sm:$0xff] }
 0x801   : > { %3403 = vmatprep.mubr.msk.f32.mxu0 %vm911_vm8, %v1451_v13  ;;  %v3148_v13 = vld [vmem:[%s4300_s5 + $0x78] sm:$0xff] }
 0x802   : > { %3404 = vmatmul.mubr.msk.f32.vlgmr.msra.gmra.mrb[12].mxu0 %vm911_vm8, %v1452_v14  ;;  %v3673_v14 = vpack.c.bf16 %v3148_v13, %v3147_v12  ;;  %v2703_v12 = vld [vmem:[%s4305_s10 + $0x8] sm:$0xff] }
 0x803   : > { %3620 = vmatpush3.bf16.msra.mxu0 %v3617_v5  ;;  %3419 = vmatprep.mubr.msk.f32.mxu0 %vm526_vm0, %v3940_v41 }
 0x804   : > { %3622 = vmatprep.subr.bf16.mxu0 %v3621_v15 }
 0x807   : > { %3624 = vmatpush3.bf16.msra.mxu0 %v3621_v15  ;;  %v3139_v15 = vld [vmem:[%s4299_s4 + $0x60] sm:$0xff] }
 0x808   : > { %3634 = vmatprep.subr.bf16.mxu0 %v3633_v18  ;;  %v3661_v17 = vpack.c.bf16 %v3140_v16, %v3139_v15  ;;  %v2705_v15 = vld [vmem:[%s4305_s10 + $0x18] sm:$0xff] }
 0x80a   : > { %3420 = vmatmul.mubr.msk.f32.vlgmr.msra.gmra.mrb[14].mxu0 %vm526_vm0, %v3952_v46 }
 0x80b   : > { %3636 = vmatpush3.bf16.msra.mxu0 %v3633_v18  ;;  %3441 = vmatprep.mubr.msk.f32.mxu0 %vm526_vm0, %v3940_v41  ;;  %v3141_v18 = vld [vmem:[%s4299_s4 + $0x70] sm:$0xff] }
 0x80c   : > { %3638 = vmatprep.subr.bf16.mxu0 %v3637_v21  ;;  %v3665_v22 = vpack.c.bf16 %v3142_v19, %v3141_v18 }
 0x80f   : > { %3640 = vmatpush3.bf16.msra.mxu0 %v3637_v21 }
 0x812   : > { %3442 = vmatmul.mubr.msk.f32.vlgmr.msra.gmra.mrb[16].mxu0 %vm526_vm0, %v3952_v46 }
 0x8d5   : > { %v3405_v27 = vpop.f32.mrb[12].mxu0 }
 0x8d6   : > { %v1528_v28 = vpop.f32.mrb[13].mxu0 }
 0x8d7   : > { %3408 = vmatprep.mubr.msk.f32.mxu1 %vm823_vm2, %v1528_v28 }
 0x8d8   : > { %3409 = vmatmul.mubr.msk.f32.vlgmr.msra.gmra.mrb[8].mxu1 %vm823_vm2, %v3405_v27 }
 0x8d9   : > { %3628 = vmatpush3.bf16.msra.mxu1 %v3625_v24  ;;  %3430 = vmatprep.mubr.msk.f32.mxu1 %vm526_vm0, %v3940_v41 }
 0x8da   : > { %3630 = vmatprep.subr.bf16.mxu1 %v3629_v29 }
 0x8dd   : > { %v3421_v30 = vpop.f32.mrb[14].mxu0  ;;  %3632 = vmatpush3.bf16.msra.mxu1 %v3629_v29 }
 0x8de   : > { %v1693_v31 = vpop.f32.mrb[15].mxu0 }
 0x8e0   : > { %3431 = vmatmul.mubr.msk.f32.vlgmr.msra.gmra.mrb[10].mxu1 %vm526_vm0, %v3952_v46 }
 0x8e1   : > { %3448 = vmatprep.mubr.msk.f32.mxu1 %vm823_vm2, %v1693_v31 }
 0x8e5   : > { %v3443_v32 = vpop.f32.mrb[16].mxu0 }
 0x8e6   : > { %v1853_v33 = vpop.f32.mrb[17].mxu0 }
 0x8e7   : > { %v3647_v34 = vpack.c.bf16 %v3443_v32, %v1853_v33 }
 0x8e9   : > { %3649 = vmatprep.subr.msk.bf16.mxu0 %vm3985_vm6, %v3647_v34 }
 0x8ea   : > { %3652 = vmatpush3.bf16.msk.msra.mxu0 %vm3985_vm6, %v3647_v34 }
 0x8eb   : > { %3654 = vmatprep.subr.bf16.mxu0 %v3653_v59 }
 0x9b3   : > { %v3432_v35 = vpop.f32.mrb[10].mxu1 }
 0x9b4   : > { %v1773_v36 = vpop.f32.mrb[11].mxu1 }
 0x9b5   : > { %v3641_v37 = vpack.c.bf16 %v3432_v35, %v1773_v36 }
 0x9b7   : > { %3643 = vmatprep.subr.msk.bf16.mxu1 %vm3970_vm3, %v3641_v37 }
 0x9b8   : > { %3646 = vmatpush3.bf16.xpose.msk.msra.mxu1 %vm3970_vm3, %v3641_v37 }
 0x9b9   : > { %3458 = vmatprep.subr.mxu1 %v3130_v60 }
 0x9bf   : > { %3449 = vmatmul.mubr.msk.f32.vlgmr.msra.gmra.mrb[12].mxu1 %vm823_vm2, %v3421_v30 }
 0x9c0   : > { %3459 = vmatpush3.msra.mxu1 %v3130_v60 }
 0x9c1   : > { %3662 = vmatprep.subr.bf16.mxu1 %v3661_v17 }
 0xa92   : > { %v3450_v38 = vpop.f32.mrb[12].mxu1 }
 0xa93   : > { %v1940_v39 = vpop.f32.mrb[13].mxu1  ;;  %v1952_v43 = vsel %vm915_vm7, %v3450_v38, -inf }
 0xa94   : > { %1953 = vmax.xlane.f32.xlu1 %v1952_v43  ;;  %v1949_v44 = vsel %vm911_vm8, %v1940_v39, -inf }
 0xa95   : > { %1950 = vmax.xlane.f32.xlu0 %v1949_v44  ;;  %v3158_v44 = vld [vmem:[%s4301_s6 + $0x18] sm:$0xff] }
 0xb21   : > { %v1954_v45 = vpop.xlane.xlu1 %1953 }
 0xb22   : > { %v1956_v47 = vsub.f32 %v3450_v38, %v1954_v45  ;;  %v1951_v48 = vpop.xlane.xlu0 %1950 }
 0xb23   : > { %v1955_v49 = vsub.f32 %v1940_v39, %v1951_v48 }
 0xb24   : > { %v1959_v50 = vmul.f32 1.442695, %v1956_v47 }
 0xb25   : > { %v1957_v51 = vmul.f32 1.442695, %v1955_v49 }
 0xb26   : > { %3750 = vpow2.f32 %v1959_v50 }
 0xb27   : > { %3752 = vpow2.f32 %v1957_v51 }
 0xb30   : > { %v3751_v52 = vpop.eup %3750 }
 0xb31   : > { %v3753_v53 = vpop.eup %3752  ;;  %v1964_v55 = vsel %vm915_vm7, %v3751_v52, 0.0 }
 0xb32   : > { %1965 = vadd.xlane.f32.xlu1 %v1964_v55  ;;  %v1961_v56 = vsel %vm911_vm8, %v3753_v53, 0.0  ;;  %v3061_v55 = vld [vmem:[%s4302_s7] ss:$0 sm:$0xff] }
 0xb33   : > { %1962 = vadd.xlane.f32.xlu0 %v1961_v56  ;;  %v579_v56 = vadd.f32 %v3061_v55, %v3894_v1  ;;  %v578_v57 = vadd.f32 %v3061_v55, %v3892_v0 }
 0xb35   : > { %v1103_v58 = vadd.f32 %v4045_v40, %v579_v56 }
 0xbbf   : > { %v1966_v62 = vpop.xlane.xlu1 %1965 }
 0xbc0   : > { %3754 = vrcp.f32 %v1966_v62  ;;  %v1963_v63 = vpop.xlane.xlu0 %1962 }
 0xbc1   : > { %3756 = vrcp.f32 %v1963_v63 }
 0xbca   : > { %v3755_v2 = vpop.eup %3754 }
 0xbcb   : > { %v3757_v5 = vpop.eup %3756  ;;  %v1970_v7 = vmul.f32 %v3755_v2, %v3751_v52 }
 0xbcc   : > { %v1969_v6 = vmul.f32 %v3757_v5, %v3753_v53 }
 0xbce   : > { %3455 = vmatprep.mubr.msk.f32.mxu0 %vm911_vm8, %v1969_v6 }
 0xbcf   : > { %3456 = vmatmul.mubr.msk.f32.vlgmr.msra.gmra.mrb[18].mxu0 %vm911_vm8, %v1970_v7 }
 0xbd0   : > { %3656 = vmatpush3.bf16.msra.mxu0 %v3653_v59  ;;  %3471 = vmatprep.mubr.msk.f32.mxu0 %vm526_vm0, %v3940_v41  ;;  %v1102_v59 = vadd.f32 %v4047_v42, %v578_v57 }
 0xbd1   : > { %3658 = vmatprep.subr.bf16.mxu0 %v3657_v8 }
 0xbd4   : > { %3660 = vmatpush3.bf16.msra.mxu0 %v3657_v8 }
 0xbd5   : > { %3670 = vmatprep.subr.bf16.mxu0 %v3669_v11 }
 0xbd7   : > { %3472 = vmatmul.mubr.msk.f32.vlgmr.msra.gmra.mrb[20].mxu0 %vm526_vm0, %v3952_v46 }
 0xbd8   : > { %3672 = vmatpush3.bf16.msra.mxu0 %v3669_v11  ;;  %3493 = vmatprep.mubr.msk.f32.mxu0 %vm526_vm0, %v3940_v41  ;;  %v2702_v11 = vld [vmem:[%s4305_s10] sm:$0xff] }
 0xbd9   : > { %3674 = vmatprep.subr.bf16.mxu0 %v3673_v14  ;;  %v3689_v13 = vpack.c.bf16 %v2703_v12, %v2702_v11 }
 0xbdc   : > { %3676 = vmatpush3.bf16.msra.mxu0 %v3673_v14  ;;  %v2704_v14 = vld [vmem:[%s4305_s10 + $0x10] sm:$0xff] }
 0xbdd   : > { %v3693_v16 = vpack.c.bf16 %v2705_v15, %v2704_v14 }
 0xbdf   : > { %3494 = vmatmul.mubr.msk.f32.vlgmr.msra.gmra.mrb[22].mxu0 %vm526_vm0, %v3952_v46 }
 0xca2   : > { %v3457_v20 = vpop.f32.mrb[18].mxu0 }
 0xca3   : > { %v2046_v21 = vpop.f32.mrb[19].mxu0 }
 0xca4   : > { %3460 = vmatprep.mubr.msk.f32.mxu1 %vm823_vm2, %v2046_v21 }
 0xca5   : > { %3461 = vmatmul.mubr.msk.f32.vlgmr.msra.gmra.mrb[8].mxu1 %vm823_vm2, %v3457_v20 }
 0xca6   : > { %3664 = vmatpush3.bf16.msra.mxu1 %v3661_v17  ;;  %3482 = vmatprep.mubr.msk.f32.mxu1 %vm526_vm0, %v3940_v41 }
 0xca7   : > { %3666 = vmatprep.subr.bf16.mxu1 %v3665_v22 }
 0xcaa   : > { %v3473_v23 = vpop.f32.mrb[20].mxu0  ;;  %3668 = vmatpush3.bf16.msra.mxu1 %v3665_v22 }
 0xcab   : > { %v2211_v24 = vpop.f32.mrb[21].mxu0 }
 0xcad   : > { %3483 = vmatmul.mubr.msk.f32.vlgmr.msra.gmra.mrb[14].mxu1 %vm526_vm0, %v3952_v46 }
 0xcae   : > { %3500 = vmatprep.mubr.msk.f32.mxu1 %vm823_vm2, %v2211_v24  ;;  %v3161_v24 = vld [vmem:[%s4303_s8] ss:$0 sm:$0xff] }
 0xcb2   : > { %v3495_v25 = vpop.f32.mrb[22].mxu0 }
 0xcb3   : > { %v2371_v26 = vpop.f32.mrb[23].mxu0 }
 0xcb4   : > { %v3683_v27 = vpack.c.bf16 %v3495_v25, %v2371_v26 }
 0xcb6   : > { %3685 = vmatprep.subr.msk.bf16.mxu0 %vm3985_vm6, %v3683_v27 }
 0xcb7   : > { %3688 = vmatpush3.bf16.msk.msra.mxu0 %vm3985_vm6, %v3683_v27 }
 0xcb8   : > { %3690 = vmatprep.subr.bf16.mxu0 %v3689_v13 }
 0xd80   : > { %v3484_v28 = vpop.f32.mrb[14].mxu1 }
 0xd81   : > { %v2291_v41 = vpop.f32.mrb[15].mxu1 }
 0xd82   : > { %v3677_v29 = vpack.c.bf16 %v3484_v28, %v2291_v41  ;;  %v3162_v28 = vld [vmem:[%s4304_s9] ss:$0 sm:$0xff] }
 0xd84   : > { %3679 = vmatprep.subr.msk.bf16.mxu1 %vm3970_vm3, %v3677_v29 }
 0xd85   : > { %3682 = vmatpush3.bf16.xpose.msk.msra.mxu1 %vm3970_vm3, %v3677_v29 }
 0xd86   : > { %3510 = vmatprep.subr.mxu1 %v3158_v44 }
 0xd8c   : > { %3501 = vmatmul.mubr.msk.f32.vlgmr.msra.gmra.mrb[16].mxu1 %vm823_vm2, %v3473_v23 }
 0xd8d   : > { %3511 = vmatpush3.msra.mxu1 %v3158_v44  ;;  %v3163_v44 = vld [vmem:[%s4306_s11] ss:$0 sm:$0xff] }
 0xe5f   : > { %v3502_v46 = vpop.f32.mrb[16].mxu1 }
 0xe60   : > { %v2458_v30 = vpop.f32.mrb[17].mxu1  ;;  %v2470_v31 = vsel %vm915_vm7, %v3502_v46, -inf }
 0xe61   : > { %2471 = vmax.xlane.f32.xlu1 %v2470_v31  ;;  %v2467_v32 = vsel %vm911_vm8, %v2458_v30, -inf  ;;  %v2848_v31 = vld [vmem:[%s4307_s12] sm:$0xff] }
 0xe62   : > { %2468 = vmax.xlane.f32.xlu0 %v2467_v32  ;;  %v2849_v32 = vld [vmem:[%s4307_s12 + $0x8] sm:$0xff] }
 0xeee   : > { %v2472_v61 = vpop.xlane.xlu1 %2471 }
 0xeef   : > { %v2474_v33 = vsub.f32 %v3502_v46, %v2472_v61  ;;  %v2469_v34 = vpop.xlane.xlu0 %2468  ;;  %v3697_v61 = vpack.c.bf16 %v2849_v32, %v2848_v31 }
 0xef0   : > { %v2473_v35 = vsub.f32 %v2458_v30, %v2469_v34  ;;  %v2851_v34 = vld [vmem:[%s4307_s12 + $0x18] sm:$0xff] }
 0xef1   : > { %v2477_v36 = vmul.f32 1.442695, %v2474_v33  ;;  %3698 = vmatprep.subr.bf16.mxu1 %v3697_v61  ;;  %v2850_v33 = vld [vmem:[%s4307_s12 + $0x10] sm:$0xff] }
 0xef2   : > { %v2475_v37 = vmul.f32 1.442695, %v2473_v35  ;;  %v3701_v35 = vpack.c.bf16 %v2851_v34, %v2850_v33 }
 0xef3   : > { %3758 = vpow2.f32 %v2477_v36  ;;  %v2852_v36 = vld [vmem:[%s4307_s12 + $0x20] sm:$0xff] }
 0xef4   : > { %3760 = vpow2.f32 %v2475_v37  ;;  %v2853_v37 = vld [vmem:[%s4307_s12 + $0x28] sm:$0xff] }
 0xefd   : > { %v3759_v54 = vpop.eup %3758 }
 0xefe   : > { %v3761_v38 = vpop.eup %3760  ;;  %v2482_v39 = vsel %vm915_vm7, %v3759_v54, 0.0 }
 0xeff   : > { %2483 = vadd.xlane.f32.xlu1 %v2482_v39  ;;  %v2479_v43 = vsel %vm911_vm8, %v3761_v38, 0.0  ;;  %v2855_v39 = vld [vmem:[%s4307_s12 + $0x38] sm:$0xff] }
 0xf00   : > { %2480 = vadd.xlane.f32.xlu0 %v2479_v43 }
 0xf8c   : > { %v2484_v45 = vpop.xlane.xlu1 %2483 }
 0xf8d   : > { %3762 = vrcp.f32 %v2484_v45  ;;  %v2481_v47 = vpop.xlane.xlu0 %2480 }
 0xf8e   : > { %3764 = vrcp.f32 %v2481_v47 }
 0xf97   : > { %v3763_v48 = vpop.eup %3762 }
 0xf98   : > { %v3765_v49 = vpop.eup %3764  ;;  %v2488_v51 = vmul.f32 %v3763_v48, %v3759_v54  ;;  %v3705_v54 = vpack.c.bf16 %v2853_v37, %v2852_v36  ;;  %v3168_v36 = vld [vmem:[%s4308_s13] ss:$0 sm:$0xff] }
 0xf99   : > { %v2487_v50 = vmul.f32 %v3765_v49, %v3761_v38  ;;  %v2854_v38 = vld [vmem:[%s4307_s12 + $0x30] sm:$0xff] }
 0xf9a   : > { %v3709_v43 = vpack.c.bf16 %v2855_v39, %v2854_v38 }
 0xf9b   : > { %3507 = vmatprep.mubr.msk.f32.mxu0 %vm911_vm8, %v2487_v50 }
 0xf9c   : > { %3508 = vmatmul.mubr.msk.f32.vlgmr.msra.gmra.mrb[24].mxu0 %vm911_vm8, %v2488_v51 }
 0xf9d   : > { %3692 = vmatpush3.bf16.msra.mxu0 %v3689_v13 }
 0xf9e   : > { %3694 = vmatprep.subr.bf16.mxu0 %v3693_v16 }
 0xfa1   : > { %3696 = vmatpush3.bf16.msra.mxu0 %v3693_v16 }
0x106f   : > { %v3509_v52 = vpop.f32.mrb[24].mxu0 }
0x1070   : > { %v2564_v53 = vpop.f32.mrb[25].mxu0 }
0x1071   : > { %3512 = vmatprep.mubr.msk.f32.mxu1 %vm823_vm2, %v2564_v53 }
0x1072   : > { %3513 = vmatmul.mubr.msk.f32.vlgmr.msra.gmra.mrb[8].mxu1 %vm823_vm2, %v3509_v52 }
0x1073   : > { %3700 = vmatpush3.bf16.msra.mxu1 %v3697_v61 }
0x1074   : > { %3702 = vmatprep.subr.bf16.mxu1 %v3701_v35 }
0x1077   : > { %3704 = vmatpush3.bf16.msra.mxu1 %v3701_v35 }
0x1078   : > { %3706 = vmatprep.subr.bf16.mxu1 %v3705_v54 }
0x107b   : > { %3708 = vmatpush3.bf16.msra.mxu1 %v3705_v54 }
0x107c   : > { %3710 = vmatprep.subr.bf16.mxu1 %v3709_v43 }
0x107f   : > { %3712 = vmatpush3.bf16.msra.mxu1 %v3709_v43 }
0x1145   : > { %v3514_v60 = vpop.f32.mrb[8].mxu1 }
0x1146   : > { %v4211_v62 = vadd.f32 %v3514_v60, %v1103_v58  ;;  %v2647_v63 = vpop.f32.mrb[9].mxu1 }
0x1147   : > { %v4213_v2 = vadd.f32 %v2647_v63, %v1102_v59 }
0x1148   : > { %v2663_v3 = vsel %vm530_vm1, %v4211_v62, 0.0 }
0x1149   : > { %2664 = vadd.xlane.f32.xlu1 %v2663_v3  ;;  %v2660_v4 = vsel %vm526_vm0, %v4213_v2, 0.0 }
0x114a   : > { %2661 = vadd.xlane.f32.xlu0 %v2660_v4 }
0x11d6   : > { %v2665_v1 = vpop.xlane.xlu1 %2664 }
0x11d7   : > { %v2667_v0 = vmul.f32 0.03125, %v2665_v1  ;;  %v2662_v5 = vpop.xlane.xlu0 %2661 }
0x11d8   : > { %v2666_v40 = vmul.f32 0.03125, %v2662_v5 }
0x11d9   : > { %v2669_v42 = vsub.f32 %v4211_v62, %v2667_v0 }
0x11da   : > { %v2668_v6 = vsub.f32 %v4213_v2, %v2666_v40 }
0x11db   : > { %v2671_v7 = vmul.f32 %v2669_v42, %v2669_v42 }
0x11dc   : > { %v2670_v8 = vmul.f32 %v2668_v6, %v2668_v6 }
0x11dd   : > { %v2675_v9 = vsel %vm530_vm1, %v2671_v7, 0.0 }
0x11de   : > { %2676 = vadd.xlane.f32.xlu1 %v2675_v9  ;;  %v2672_v10 = vsel %vm526_vm0, %v2670_v8, 0.0 }
0x11df   : > { %2673 = vadd.xlane.f32.xlu0 %v2672_v10 }
0x126b   : > { %v2677_v17 = vpop.xlane.xlu1 %2676 }
0x126c   : > { %v2679_v18 = vmul.f32 0.03125, %v2677_v17  ;;  %v2674_v19 = vpop.xlane.xlu0 %2673 }
0x126d   : > { %v2678_v20 = vmul.f32 0.03125, %v2674_v19 }
0x126e   : > { %v2681_v21 = vadd.f32 1e-05, %v2679_v18 }
0x126f   : > { %v2680_v22 = vadd.f32 1e-05, %v2678_v20 }
0x1270   : > { %3766 = vrsqrt.f32 %v2681_v21 }
0x1271   : > { %3768 = vrsqrt.f32 %v2680_v22 }
0x127a   : > { %v3767_v23 = vpop.eup %3766 }
0x127b   : > { %v3769_v25 = vpop.eup %3768  ;;  %v2685_v26 = vmul.f32 %v3767_v23, %v2669_v42 }
0x127c   : > { %v2684_v27 = vmul.f32 %v3769_v25, %v2668_v6 }
0x127d   : > { %v2693_v41 = vmul.f32 %v3161_v24, %v2685_v26 }
0x127e   : > { %v2692_v29 = vmul.f32 %v3161_v24, %v2684_v27 }
0x127f   : > { %v2701_v30 = vadd.f32 %v3162_v28, %v2693_v41 }
0x1280   : > { %v2700_v46 = vadd.f32 %v3162_v28, %v2692_v29 }
0x1282   : > { %3523 = vmatprep.mubr.msk.f32.mxu0 %vm526_vm0, %v2700_v46 }
0x1283   : > { %3524 = vmatmul.mubr.msk.f32.vlgmr.msra.gmra.mrb[26].mxu0 %vm526_vm0, %v2701_v30 }
0x1356   : > { %v3525_v45 = vpop.f32.mrb[26].mxu0 }
0x1357   : > { %v2791_v47 = vadd.f32 %v3525_v45, %v3163_v44  ;;  %v2785_v48 = vpop.f32.mrb[27].mxu0 }
0x1358   : > { %v2786_v49 = vadd.f32 %v3163_v44, %v2785_v48 }
0x1359   : > { %v2797_v50 = vmul.f32 0.70710677, %v2791_v47  ;;  %v2795_v61 = vmul.f32 0.5, %v2791_v47 }
0x135a   : > { %v2796_v51 = vmul.f32 0.70710677, %v2786_v49  ;;  %v2794_v31 = vmul.f32 0.5, %v2786_v49 }
0x135b   : > { %v2799_v52 = vand.u32 2147483647, %v2797_v50  ;;  %vm2839_vm9 = vcmp.ge.f32.partialorder %v2797_v50, 0.0 }
0x135c   : > { %v2798_v53 = vand.u32 2147483647, %v2796_v51  ;;  %vm2838_vm10 = vcmp.ge.f32.partialorder %v2796_v51, 0.0 }
0x135d   : > { %v2801_v55 = vmul.f32 0.3275911, %v2799_v52  ;;  %v2827_v59 = vsub.f32 0.0, %v2799_v52 }
0x135e   : > { %v2800_v56 = vmul.f32 0.3275911, %v2798_v53  ;;  %v2826_v60 = vsub.f32 0.0, %v2798_v53 }
0x135f   : > { %v2803_v57 = vadd.f32 1.0, %v2801_v55  ;;  %v2829_v3 = vmul.f32 %v2827_v59, %v2799_v52 }
0x1360   : > { %v2802_v58 = vadd.f32 1.0, %v2800_v56  ;;  %v2828_v0 = vmul.f32 %v2826_v60, %v2798_v53 }
0x1361   : > { %3770 = vrcp.f32 %v2803_v57  ;;  %v2832_v42 = vmul.f32 1.442695, %v2829_v3 }
0x1362   : > { %3772 = vrcp.f32 %v2802_v58  ;;  %v2830_v8 = vmul.f32 1.442695, %v2828_v0 }
0x1363   : > { %3774 = vpow2.f32 %v2832_v42 }
0x1364   : > { %3776 = vpow2.f32 %v2830_v8 }
0x136b   : > { %v3771_v63 = vpop.eup %3770 }
0x136c   : > { %v3773_v4 = vpop.eup %3772  ;;  %v2809_v1 = vmul.f32 1.0614054, %v3771_v63 }
0x136d   : > { %v2808_v5 = vmul.f32 1.0614054, %v3773_v4  ;;  %v3775_v21 = vpop.eup %3774 }
0x136e   : > { %v2811_v40 = vadd.f32 -1.4531521, %v2809_v1  ;;  %v3777_v23 = vpop.eup %3776 }
0x136f   : > { %v2810_v6 = vadd.f32 -1.4531521, %v2808_v5  ;;  %v3170_v5 = vld [vmem:[%s4310_s15] ss:$0 sm:$0xff] }
0x1370   : > { %v2813_v7 = vmul.f32 %v3771_v63, %v2811_v40 }
0x1371   : > { %v2812_v9 = vmul.f32 %v3773_v4, %v2810_v6 }
0x1372   : > { %v2815_v10 = vadd.f32 1.4214138, %v2813_v7 }
0x1373   : > { %v2814_v11 = vadd.f32 1.4214138, %v2812_v9 }
0x1374   : > { %v2817_v12 = vmul.f32 %v3771_v63, %v2815_v10 }
0x1375   : > { %v2816_v13 = vmul.f32 %v3773_v4, %v2814_v11 }
0x1376   : > { %v2819_v14 = vadd.f32 -0.28449672, %v2817_v12 }
0x1377   : > { %v2818_v15 = vadd.f32 -0.28449672, %v2816_v13 }
0x1378   : > { %v2821_v16 = vmul.f32 %v3771_v63, %v2819_v14 }
0x1379   : > { %v2820_v17 = vmul.f32 %v3773_v4, %v2818_v15 }
0x137a   : > { %v2823_v18 = vadd.f32 0.2548296, %v2821_v16 }
0x137b   : > { %v2822_v19 = vadd.f32 0.2548296, %v2820_v17 }
0x137c   : > { %v2825_v20 = vmul.f32 %v3771_v63, %v2823_v18 }
0x137d   : > { %v2824_v22 = vmul.f32 %v3773_v4, %v2822_v19  ;;  %v3169_v4 = vld [vmem:[%s4309_s14] ss:$0 sm:$0xff] }
0x137e   : > { %v2835_v24 = vmul.f32 %v3775_v21, %v2825_v20 }
0x137f   : > { %v2834_v25 = vmul.f32 %v3777_v23, %v2824_v22 }
0x1380   : > { %v2837_v26 = vsub.f32 1.0, %v2835_v24 }
0x1381   : > { %v2836_v27 = vsub.f32 1.0, %v2834_v25 }
0x1382   : > { %v2841_v28 = vsub.f32 0.0, %v2837_v26 }
0x1383   : > { %v2840_v41 = vsub.f32 0.0, %v2836_v27 }
0x1384   : > { %v2843_v29 = vsel %vm2839_vm9, %v2837_v26, %v2841_v28 }
0x1385   : > { %v2845_v46 = vadd.f32 1.0, %v2843_v29  ;;  %v2842_v30 = vsel %vm2838_vm10, %v2836_v27, %v2840_v41 }
0x1386   : > { %v2844_v32 = vadd.f32 1.0, %v2842_v30 }
0x1387   : > { %v2847_v34 = vmul.f32 %v2845_v46, %v2795_v61 }
0x1388   : > { %v2846_v33 = vmul.f32 %v2844_v32, %v2794_v31 }
0x138a   : > { %3542 = vmatprep.mubr.msk.f32.mxu1 %vm2856_vm11, %v2846_v33 }
0x138b   : > { %3543 = vmatmul.mubr.msk.f32.vlgmr.msra.gmra.mrb[18].mxu1 %vm2856_vm11, %v2847_v34 }
0x145e   : > { %v3544_v35 = vpop.f32.mrb[18].mxu1 }
0x145f   : > { %v2939_v37 = vadd.f32 %v4211_v62, %v3544_v35  ;;  %v2929_v54 = vpop.f32.mrb[19].mxu1 }
0x1460   : > { %v2938_v38 = vadd.f32 %v4213_v2, %v2929_v54 }
0x1461   : > { %v2948_v39 = vadd.f32 %v3168_v36, %v2939_v37 }
0x1462   : > { %v2947_v43 = vadd.f32 %v3168_v36, %v2938_v38 }
0x1463   : > { %v2954_v44 = vsel %vm530_vm1, %v2948_v39, 0.0 }
0x1464   : > { %2955 = vadd.xlane.f32.xlu1 %v2954_v44  ;;  %v2951_v45 = vsel %vm526_vm0, %v2947_v43, 0.0 }
0x1465   : > { %2952 = vadd.xlane.f32.xlu0 %v2951_v45 }
0x14f1   : > { %v2956_v47 = vpop.xlane.xlu1 %2955 }
0x14f2   : > { %v2958_v48 = vmul.f32 0.03125, %v2956_v47  ;;  %v2953_v49 = vpop.xlane.xlu0 %2952 }
0x14f3   : > { %v2957_v50 = vmul.f32 0.03125, %v2953_v49 }
0x14f4   : > { %v2960_v51 = vsub.f32 %v2948_v39, %v2958_v48 }
0x14f5   : > { %v2959_v52 = vsub.f32 %v2947_v43, %v2957_v50 }
0x14f6   : > { %v2962_v53 = vmul.f32 %v2960_v51, %v2960_v51 }
0x14f7   : > { %v2961_v55 = vmul.f32 %v2959_v52, %v2959_v52 }
0x14f8   : > { %v2966_v62 = vsel %vm530_vm1, %v2962_v53, 0.0 }
0x14f9   : > { %2967 = vadd.xlane.f32.xlu1 %v2966_v62  ;;  %v2963_v2 = vsel %vm526_vm0, %v2961_v55, 0.0 }
0x14fa   : > { %2964 = vadd.xlane.f32.xlu0 %v2963_v2 }
0x1586   : > { %v2968_v56 = vpop.xlane.xlu1 %2967 }
0x1587   : > { %v2970_v57 = vmul.f32 0.03125, %v2968_v56  ;;  %v2965_v58 = vpop.xlane.xlu0 %2964 }
0x1588   : > { %v2969_v59 = vmul.f32 0.03125, %v2965_v58 }
0x1589   : > { %v2972_v60 = vadd.f32 1e-05, %v2970_v57 }
0x158a   : > { %v2971_v63 = vadd.f32 1e-05, %v2969_v59 }
0x158b   : > { %3778 = vrsqrt.f32 %v2972_v60 }
0x158c   : > { %3780 = vrsqrt.f32 %v2971_v63 }
0x1595   : > { %v3779_v3 = vpop.eup %3778 }
0x1596   : > { %v3781_v1 = vpop.eup %3780  ;;  %v2976_v0 = vmul.f32 %v3779_v3, %v2960_v51 }
0x1597   : > { %v2975_v40 = vmul.f32 %v3781_v1, %v2959_v52 }
0x1598   : > { %v2984_v42 = vmul.f32 %v3169_v4, %v2976_v0 }
0x1599   : > { %v2983_v6 = vmul.f32 %v3169_v4, %v2975_v40 }
0x159a   : > { %v2992_v7 = vadd.f32 %v3170_v5, %v2984_v42 }
0x159b   : > { %v2991_v8 = vadd.f32 %v3170_v5, %v2983_v6 }
0x159c   : > { %2994 = vst.msk [vmem:[%s521_s17 + $0x8] sm:$0x1] %vm530_vm1, %v2992_v7 }
0x159d   : > { %2993 = vst.msk [vmem:[%s521_s17] sm:$0xff] %vm526_vm0, %v2991_v8 }
0x159e PF: > { %s26_s21 = sadd.s32 1, %s3788_s21  }
0x159f   : > { %p23_p4 = scmp.ge.s32.totalorder %s26_s21, 4  }
0x15a1   :  { %25 = sbr.rel (!%p23_p4) target bundleno = 2 (0x2), region = 126 }

</bundles_post_ra>
